<compile_context>
chip_gen: v7x
topology: tpu7x:2x2x1
jax: 0.10.0
libtpu: 0.0.40
codegen_flags: <defaults>
</compile_context>

<pallas_src>
import functools

import jax
import jax.numpy as jnp
from jax import lax
from jax.experimental import pallas as pl
from jax.experimental.pallas import tpu as pltpu

# -------------------- small, synthetic hyper-parameters ---------------------
N_MELS = 32        # feature_size (real Qwen2-Audio: 128)
D_MODEL = 64       # audio-tower width
N_HEADS = 4
HEAD_DIM = D_MODEL // N_HEADS
FFN_DIM = 128
N_LAYERS = 2
LLM_HIDDEN = 64    # multi_modal_projector output width
BATCH = 2
T_IN = 16          # mel frames fed to conv1
MAX_POS = 64       # embed_positions rows
LN_EPS = 1e-5
CONV_K = 3
CONV_PAD = 1


def _gelu(x):
    # tanh-approx GELU: tanh lowers to the EUP (separate VLIW slot), vs ~20
    # VALU ops for an erf polynomial. Matches torch GELU to ~1e-3.
    return jax.nn.gelu(x, approximate=True)


def _layernorm_f32(x, g, b, eps):
    mean = jnp.mean(x, axis=-1, keepdims=True)
    xc = x - mean
    var = jnp.mean(xc * xc, axis=-1, keepdims=True)
    return xc * lax.rsqrt(var + eps) * g + b


# ======================= conv1 (stride 1) + GELU ============================
def _conv_s1_gelu_kernel(x_ref, w_ref, b_ref, o_ref, *, k_size, t_out, c_in):
    # x_ref: (T_pad, Cin) f32; w_ref: (K*Cin, Cout) bf16; b_ref: (1, Cout) f32
    xv = x_ref[...]
    cout = w_ref.shape[-1]
    acc = jnp.zeros((t_out, cout), jnp.float32)
    for k in range(k_size):            # in-VMEM im2col: K shifted static slices
        xk = xv[k:k + t_out, :].astype(jnp.bfloat16)
        wk = w_ref[k * c_in:(k + 1) * c_in, :]
        acc = acc + jnp.dot(xk, wk, preferred_element_type=jnp.float32)
    acc = acc + b_ref[...]
    o_ref[...] = _gelu(acc).astype(o_ref.dtype)


def conv1_gelu(x_ntc, w_mat, b):
    B, T, Cin = x_ntc.shape
    KC, Cout = w_mat.shape
    T_pad = T + 2 * CONV_PAD
    T_out = T_pad - CONV_K + 1
    xp = jnp.pad(x_ntc, ((0, 0), (CONV_PAD, CONV_PAD), (0, 0)))
    kernel = functools.partial(_conv_s1_gelu_kernel,
                               k_size=CONV_K, t_out=T_out, c_in=Cin)
    return pl.pallas_call(
        kernel,
        out_shape=jax.ShapeDtypeStruct((B, T_out, Cout), jnp.float32),
        grid=(B,),
        in_specs=[
            pl.BlockSpec((None, T_pad, Cin), lambda i: (i, 0, 0)),
            pl.BlockSpec((KC, Cout), lambda i: (0, 0)),
            pl.BlockSpec((1, Cout), lambda i: (0, 0)),
        ],
        out_specs=pl.BlockSpec((None, T_out, Cout), lambda i: (i, 0, 0)),
        compiler_params=pltpu.CompilerParams(dimension_semantics=("parallel",)),
    )(xp, w_mat, b)


# ============== conv2 (stride 2) + GELU + positional-embed add ==============
def _conv_s2_gelu_pos_kernel(x_ref, w_ref, b_ref, pos_ref, o_ref, *, t_out, c_in):
    # x_ref: (T_pad/2, 2*Cin); row r = [x_pad[2r] | x_pad[2r+1]] (lane-concat).
    # out[t] = gelu(sum_k x_pad[2t+k] @ w_k + b) + pos[t]
    xv = x_ref[...]
    x0 = xv[0:t_out, 0:c_in].astype(jnp.bfloat16)            # x_pad[2t]
    x1 = xv[0:t_out, c_in:2 * c_in].astype(jnp.bfloat16)     # x_pad[2t+1]
    x2 = xv[1:t_out + 1, 0:c_in].astype(jnp.bfloat16)        # x_pad[2t+2]
    acc = jnp.dot(x0, w_ref[0:c_in, :], preferred_element_type=jnp.float32)
    acc = acc + jnp.dot(x1, w_ref[c_in:2 * c_in, :],
                        preferred_element_type=jnp.float32)
    acc = acc + jnp.dot(x2, w_ref[2 * c_in:3 * c_in, :],
                        preferred_element_type=jnp.float32)
    acc = acc + b_ref[...]
    o_ref[...] = (_gelu(acc) + pos_ref[...]).astype(o_ref.dtype)


def conv2_gelu_pos(x_ntc, w_mat, b, embed_positions):
    B, T, Cin = x_ntc.shape
    KC, Cout = w_mat.shape
    T_pad = T + 2 * CONV_PAD
    assert T_pad % 2 == 0
    T_out = (T_pad - CONV_K) // 2 + 1
    if T_out > embed_positions.shape[0]:
        raise ValueError(
            f"seq_len {T_out} exceeds embed_positions rows {embed_positions.shape[0]}")
    pos = embed_positions[:T_out]
    xp = jnp.pad(x_ntc, ((0, 0), (CONV_PAD, CONV_PAD), (0, 0)))
    # Free (row-major) reshape: lane-concat adjacent time steps so the stride-2
    # taps become static slices inside the kernel.
    x2 = xp.reshape(B, T_pad // 2, 2 * Cin)
    kernel = functools.partial(_conv_s2_gelu_pos_kernel, t_out=T_out, c_in=Cin)
    return pl.pallas_call(
        kernel,
        out_shape=jax.ShapeDtypeStruct((B, T_out, Cout), jnp.float32),
        grid=(B,),
        in_specs=[
            pl.BlockSpec((None, T_pad // 2, 2 * Cin), lambda i: (i, 0, 0)),
            pl.BlockSpec((KC, Cout), lambda i: (0, 0)),
            pl.BlockSpec((1, Cout), lambda i: (0, 0)),
            pl.BlockSpec((T_out, Cout), lambda i: (0, 0)),
        ],
        out_specs=pl.BlockSpec((None, T_out, Cout), lambda i: (i, 0, 0)),
        compiler_params=pltpu.CompilerParams(dimension_semantics=("parallel",)),
    )(x2, w_mat, b, pos)


# ========= fused encoder layer: LN1 + QKV + attn + o-proj + residual =========
# =========                     LN2 + fc1 + gelu + fc2 + residual     =========
def _encoder_layer_kernel(h_ref, g1_ref, b1_ref, wqkv_ref, bqkv_ref,
                          wo_ref, bo_ref, g2_ref, b2_ref,
                          w1_ref, fb1_ref, w2_ref, fb2_ref, o_ref,
                          *, n_heads, head_dim, eps):
    x = h_ref[...].astype(jnp.float32)                         # (T, D) residual
    d = x.shape[-1]

    # ---------------- self-attention sub-block (pre-LN) ----------------
    xn = _layernorm_f32(x, g1_ref[...], b1_ref[...], eps)
    qkv = jnp.dot(xn.astype(jnp.bfloat16), wqkv_ref[...],
                  preferred_element_type=jnp.float32) + bqkv_ref[...]   # (T, 3D)
    scale = head_dim ** -0.5
    outs = []
    for h in range(n_heads):                                   # static head loop
        hs, he = h * head_dim, (h + 1) * head_dim
        q = (qkv[:, hs:he] * scale).astype(jnp.bfloat16)
        k = qkv[:, d + hs:d + he].astype(jnp.bfloat16)
        v = qkv[:, 2 * d + hs:2 * d + he].astype(jnp.bfloat16)
        # contract last dims of q and k (no explicit transpose / XLU pass)
        s = lax.dot_general(q, k, (((1,), (1,)), ((), ())),
                            preferred_element_type=jnp.float32)          # (T, T)
        s = s - jnp.max(s, axis=-1, keepdims=True)
        p = jnp.exp(s)
        p = p * pl.reciprocal(jnp.sum(p, axis=-1, keepdims=True), approx=True)
        outs.append(jnp.dot(p.astype(jnp.bfloat16), v,
                            preferred_element_type=jnp.float32))
    attn = jnp.concatenate(outs, axis=-1)                      # (T, D) lane-dense
    x = x + jnp.dot(attn.astype(jnp.bfloat16), wo_ref[...],
                    preferred_element_type=jnp.float32) + bo_ref[...]

    # ------------------------ MLP sub-block (pre-LN) --------------------
    xn2 = _layernorm_f32(x, g2_ref[...], b2_ref[...], eps)
    a = jnp.dot(xn2.astype(jnp.bfloat16), w1_ref[...],
                preferred_element_type=jnp.float32) + fb1_ref[...]
    a = _gelu(a)
    y = jnp.dot(a.astype(jnp.bfloat16), w2_ref[...],
                preferred_element_type=jnp.float32) + fb2_ref[...]
    o_ref[...] = (x + y).astype(o_ref.dtype)


def encoder_layer(h, lp):
    B, T, D = h.shape
    F = lp["w1"].shape[1]
    kernel = functools.partial(_encoder_layer_kernel, n_heads=N_HEADS,
                               head_dim=HEAD_DIM, eps=LN_EPS)
    return pl.pallas_call(
        kernel,
        out_shape=jax.ShapeDtypeStruct((B, T, D), h.dtype),
        grid=(B,),
        in_specs=[
            pl.BlockSpec((None, T, D), lambda i: (i, 0, 0)),
            pl.BlockSpec((1, D), lambda i: (0, 0)),           # ln1_g
            pl.BlockSpec((1, D), lambda i: (0, 0)),           # ln1_b
            pl.BlockSpec((D, 3 * D), lambda i: (0, 0)),       # wqkv
            pl.BlockSpec((1, 3 * D), lambda i: (0, 0)),       # bqkv
            pl.BlockSpec((D, D), lambda i: (0, 0)),           # wo
            pl.BlockSpec((1, D), lambda i: (0, 0)),           # bo
            pl.BlockSpec((1, D), lambda i: (0, 0)),           # ln2_g
            pl.BlockSpec((1, D), lambda i: (0, 0)),           # ln2_b
            pl.BlockSpec((D, F), lambda i: (0, 0)),           # w1
            pl.BlockSpec((1, F), lambda i: (0, 0)),           # b1
            pl.BlockSpec((F, D), lambda i: (0, 0)),           # w2
            pl.BlockSpec((1, D), lambda i: (0, 0)),           # b2
        ],
        out_specs=pl.BlockSpec((None, T, D), lambda i: (i, 0, 0)),
        compiler_params=pltpu.CompilerParams(dimension_semantics=("parallel",)),
    )(h, lp["ln1_g"], lp["ln1_b"], lp["wqkv"], lp["bqkv"], lp["wo"], lp["bo"],
      lp["ln2_g"], lp["ln2_b"], lp["w1"], lp["b1"], lp["w2"], lp["b2"])


# ======== fused AvgPool1d(2,2) + LayerNorm + multi_modal_projector ==========
def _pool_ln_proj_kernel(x_ref, g_ref, b_ref, w_ref, bp_ref, o_ref, *, d, eps):
    # x_ref: (tile_m, 2*D); row r = [h[2r] | h[2r+1]] (lane-concat time pairs)
    xp = x_ref[...].astype(jnp.float32)
    x = 0.5 * (xp[:, :d] + xp[:, d:2 * d])                    # AvgPool1d(2,2)
    xn = _layernorm_f32(x, g_ref[...], b_ref[...], eps)
    y = jnp.dot(xn.astype(jnp.bfloat16), w_ref[...],
                preferred_element_type=jnp.float32) + bp_ref[...]
    o_ref[...] = y.astype(o_ref.dtype)


def pool_ln_proj(h, ln_g, ln_b, proj_w, proj_b):
    B, T, D = h.shape
    T_out = T // 2                 # odd T drops last frame (AvgPool1d default)
    N = proj_w.shape[1]
    x = h[:, :2 * T_out, :].reshape(B * T_out, 2 * D)   # free lane-concat reshape
    M = B * T_out
    tile_m = min(M, 256)
    assert M % tile_m == 0
    kernel = functools.partial(_pool_ln_proj_kernel, d=D, eps=LN_EPS)
    out = pl.pallas_call(
        kernel,
        out_shape=jax.ShapeDtypeStruct((M, N), jnp.float32),
        grid=(M // tile_m,),
        in_specs=[
            pl.BlockSpec((tile_m, 2 * D), lambda i: (i, 0)),
            pl.BlockSpec((1, D), lambda i: (0, 0)),
            pl.BlockSpec((1, D), lambda i: (0, 0)),
            pl.BlockSpec((D, N), lambda i: (0, 0)),
            pl.BlockSpec((1, N), lambda i: (0, 0)),
        ],
        out_specs=pl.BlockSpec((tile_m, N), lambda i: (i, 0)),
        compiler_params=pltpu.CompilerParams(dimension_semantics=("parallel",)),
    )(x, ln_g, ln_b, proj_w, proj_b)
    return out.reshape(B, T_out, N)


# -------------------- full forward (Qwen2Audio.forward) ----------------------
def qwen2_audio_forward(input_features, kp):
    """input_features: (B, n_mels, T) -- same NCW layout PyTorch Conv1d gets."""
    x = jnp.transpose(input_features, (0, 2, 1)).astype(jnp.float32)  # -> NTC
    x = conv1_gelu(x, kp["conv1_wmat"], kp["conv1_b"])                # gelu(conv1)
    x = conv2_gelu_pos(x, kp["conv2_wmat"], kp["conv2_b"],            # gelu(conv2)
                       kp["embed_positions"])                         # + pos
    for lp in kp["layers"]:
        x = encoder_layer(x, lp)                                      # 1 call/layer
    return pool_ln_proj(x, kp["ln_g"], kp["ln_b"], kp["proj_w"], kp["proj_b"])


# -------------------- deterministic synthetic parameters ---------------------
# init_params keeps PyTorch-style layouts (Conv1d (out,in,K); Linear stored as
# (in,out)); prepare_params builds the fused / bf16 operands the kernels use.
def init_params(key):
    keys = iter(jax.random.split(key, 64))

    def w(shape, scale=0.02):
        return scale * jax.random.normal(next(keys), shape, jnp.float32)

    layers = []
    for _ in range(N_LAYERS):
        layers.append(dict(
            ln1_g=1.0 + w((D_MODEL,), 0.1), ln1_b=w((D_MODEL,), 0.1),
            q_w=w((D_MODEL, D_MODEL)), q_b=w((D_MODEL,), 0.01),
            k_w=w((D_MODEL, D_MODEL)),                      # k_proj bias=False
            v_w=w((D_MODEL, D_MODEL)), v_b=w((D_MODEL,), 0.01),
            o_w=w((D_MODEL, D_MODEL)), o_b=w((D_MODEL,), 0.01),
            ln2_g=1.0 + w((D_MODEL,), 0.1), ln2_b=w((D_MODEL,), 0.1),
            fc1_w=w((D_MODEL, FFN_DIM)), fc1_b=w((FFN_DIM,), 0.01),
            fc2_w=w((FFN_DIM, D_MODEL)), fc2_b=w((D_MODEL,), 0.01),
        ))
    return dict(
        conv1_w=w((D_MODEL, N_MELS, 3)), conv1_b=w((D_MODEL,), 0.01),
        conv2_w=w((D_MODEL, D_MODEL, 3)), conv2_b=w((D_MODEL,), 0.01),
        embed_positions=w((MAX_POS, D_MODEL)),
        layers=layers,
        ln_g=1.0 + w((D_MODEL,), 0.1), ln_b=w((D_MODEL,), 0.1),
        proj_w=w((D_MODEL, LLM_HIDDEN)), proj_b=w((LLM_HIDDEN,), 0.01),
    )


def prepare_params(p):
    def conv_mat(wc):   # PyTorch (Cout, Cin, K) -> (K*Cin, Cout), bf16
        return jnp.transpose(wc, (2, 1, 0)).reshape(-1, wc.shape[0]).astype(jnp.bfloat16)

    layers = []
    for lp in p["layers"]:
        wqkv = jnp.concatenate([lp["q_w"], lp["k_w"], lp["v_w"]],
                               axis=1).astype(jnp.bfloat16)
        # k_proj has no bias: zeros embedded in the single fused QKV bias add.
        bqkv = jnp.concatenate([lp["q_b"], jnp.zeros((D_MODEL,), jnp.float32),
                                lp["v_b"]]).reshape(1, -1)
        layers.append(dict(
            ln1_g=lp["ln1_g"].reshape(1, -1), ln1_b=lp["ln1_b"].reshape(1, -1),
            wqkv=wqkv, bqkv=bqkv,
            wo=lp["o_w"].astype(jnp.bfloat16), bo=lp["o_b"].reshape(1, -1),
            ln2_g=lp["ln2_g"].reshape(1, -1), ln2_b=lp["ln2_b"].reshape(1, -1),
            w1=lp["fc1_w"].astype(jnp.bfloat16), b1=lp["fc1_b"].reshape(1, -1),
            w2=lp["fc2_w"].astype(jnp.bfloat16), b2=lp["fc2_b"].reshape(1, -1),
        ))
    return dict(
        conv1_wmat=conv_mat(p["conv1_w"]), conv1_b=p["conv1_b"].reshape(1, -1),
        conv2_wmat=conv_mat(p["conv2_w"]), conv2_b=p["conv2_b"].reshape(1, -1),
        embed_positions=p["embed_positions"],
        layers=layers,
        ln_g=p["ln_g"].reshape(1, -1), ln_b=p["ln_b"].reshape(1, -1),
        proj_w=p["proj_w"].astype(jnp.bfloat16),
        proj_b=p["proj_b"].reshape(1, -1),
    )


# -------------------- pure-JAX reference (f32) for validation ----------------
def reference_forward(input_features, p):
    def conv1d(x_ntc, wc, b, stride):
        y = lax.conv_general_dilated(
            x_ntc, jnp.transpose(wc, (2, 1, 0)),            # (K, Cin, Cout)
            window_strides=(stride,), padding=[(CONV_PAD, CONV_PAD)],
            dimension_numbers=("NWC", "WIO", "NWC"))
        return y + b

    x = jnp.transpose(input_features, (0, 2, 1)).astype(jnp.float32)
    x = _gelu(conv1d(x, p["conv1_w"], p["conv1_b"], 1))
    x = _gelu(conv1d(x, p["conv2_w"], p["conv2_b"], 2))
    T = x.shape[1]
    x = x + p["embed_positions"][:T]
    for lp in p["layers"]:
        res = x
        xn = _layernorm_f32(x, lp["ln1_g"], lp["ln1_b"], LN_EPS)
        q = (xn @ lp["q_w"] + lp["q_b"]) * HEAD_DIM ** -0.5
        k = xn @ lp["k_w"]
        v = xn @ lp["v_w"] + lp["v_b"]
        B, Tt, D = q.shape
        q = q.reshape(B, Tt, N_HEADS, HEAD_DIM).transpose(0, 2, 1, 3)
        k = k.reshape(B, Tt, N_HEADS, HEAD_DIM).transpose(0, 2, 1, 3)
        v = v.reshape(B, Tt, N_HEADS, HEAD_DIM).transpose(0, 2, 1, 3)
        s = jnp.einsum("bhqd,bhkd->bhqk", q, k)
        pmat = jax.nn.softmax(s, axis=-1)
        o = jnp.einsum("bhqk,bhkd->bhqd", pmat, v)
        o = o.transpose(0, 2, 1, 3).reshape(B, Tt, D)
        x = res + (o @ lp["o_w"] + lp["o_b"])
        res = x
        xn2 = _layernorm_f32(x, lp["ln2_g"], lp["ln2_b"], LN_EPS)
        x = res + (_gelu(xn2 @ lp["fc1_w"] + lp["fc1_b"]) @ lp["fc2_w"]
                   + lp["fc2_b"])
    Tp = x.shape[1] // 2
    x = 0.5 * (x[:, 0:2 * Tp:2, :] + x[:, 1:2 * Tp:2, :])
    x = _layernorm_f32(x, p["ln_g"], p["ln_b"], LN_EPS)
    return x @ p["proj_w"] + p["proj_b"]


# TODO(synk): the STFT/mel front-end (_torch_extract_fbank_features), tokenizer
# and embed() are host-side preprocessing outside Audio.forward; not kernelized.
# TODO(synk): at real Qwen2-Audio sizes (d_model=1280, ffn=5120, T~1500) the
# MLP/QKV weights need K/N grid tiling (256-aligned on v6e/v7x, 128 on v5e,
# vmem_limit_bytes set for v7x's 64 MiB) and attention needs a flash-style KV
# grid axis; omitted at these synthetic shapes where everything fits VMEM.

if __name__ == "__main__":
    key = jax.random.PRNGKey(0)
    pkey, xkey = jax.random.split(key)
    params = init_params(pkey)
    kparams = prepare_params(params)
    input_features = jax.random.normal(xkey, (BATCH, N_MELS, T_IN), jnp.float32)

    fwd = jax.jit(qwen2_audio_forward)
    out = jax.block_until_ready(fwd(input_features, kparams))

    assert out.shape == (BATCH, T_IN // 2 // 2, LLM_HIDDEN), out.shape
    assert bool(jnp.all(jnp.isfinite(out)))

    # numeric cross-check vs. pure-JAX f32 reference (bf16 MXU => loose atol)
    ref = jax.block_until_ready(jax.jit(reference_forward)(input_features, params))
    max_err = float(jnp.max(jnp.abs(out - ref)))
    assert max_err < 2e-2, f"max abs error vs reference: {max_err}"

    print("KERNEL_OK")
</pallas_src>

<mosaic_0001>
module attributes {stable_mosaic.version = 11 : i64} {
  func.func @_conv_s1_gelu_kernel(%arg0: i32, %arg1: memref<1x18x32xf32, #tpu.memory_space<vmem>>, %arg2: memref<96x64xbf16, #tpu.memory_space<vmem>>, %arg3: memref<1x64xf32, #tpu.memory_space<vmem>>, %arg4: memref<1x16x64xf32, #tpu.memory_space<vmem>>) attributes {dimension_semantics = [#tpu.dimension_semantics<parallel>], iteration_bounds = array<i64: 2>, scalar_prefetch = 0 : i64, scratch_operands = 0 : i64, tpu.core_type = #tpu.core_type<tc>, window_params = [{transform_indices = @transform_0, window_bounds = array<i64: 1, 18, 32>}, {pipeline_mode = #tpu.pipeline_mode<synchronous>, transform_indices = @transform_1, window_bounds = array<i64: 96, 64>}, {pipeline_mode = #tpu.pipeline_mode<synchronous>, transform_indices = @transform_2, window_bounds = array<i64: 1, 64>}, {transform_indices = @transform_3, window_bounds = array<i64: 1, 16, 64>}]} {
    %c0 = arith.constant 0 : index
    %c0_0 = arith.constant 0 : index
    %c0_1 = arith.constant 0 : index
    %0 = vector.load %arg1[%c0, %c0_0, %c0_1] : memref<1x18x32xf32, #tpu.memory_space<vmem>>, vector<1x18x32xf32>
    %1 = vector.shape_cast %0 : vector<1x18x32xf32> to vector<18x32xf32>
    %cst = arith.constant 0.000000e+00 : f32
    %2 = vector.broadcast %cst : f32 to vector<16x64xf32>
    %3 = vector.extract_strided_slice %1 {offsets = [0, 0], sizes = [16, 32], strides = [1, 1]} : vector<18x32xf32> to vector<16x32xf32>
    %4 = arith.truncf %3 : vector<16x32xf32> to vector<16x32xbf16>
    %c0_2 = arith.constant 0 : index
    %c0_3 = arith.constant 0 : index
    %5 = vector.load %arg2[%c0_2, %c0_3] : memref<96x64xbf16, #tpu.memory_space<vmem>>, vector<32x64xbf16>
    %cst_4 = arith.constant dense<0.000000e+00> : vector<16x64xf32>
    %6 = tpu.matmul %4, %5, %cst_4 {dimension_numbers = #tpu.dot_dimension_numbers<[1], [0], [0], [1], [0, 0, 1, 1], [], []>} : vector<16x32xbf16>, vector<32x64xbf16>, vector<16x64xf32> -> vector<16x64xf32>
    %7 = arith.addf %2, %6 : vector<16x64xf32>
    %8 = vector.extract_strided_slice %1 {offsets = [1, 0], sizes = [16, 32], strides = [1, 1]} : vector<18x32xf32> to vector<16x32xf32>
    %9 = arith.truncf %8 : vector<16x32xf32> to vector<16x32xbf16>
    %c32 = arith.constant 32 : index
    %c0_5 = arith.constant 0 : index
    %10 = vector.load %arg2[%c32, %c0_5] : memref<96x64xbf16, #tpu.memory_space<vmem>>, vector<32x64xbf16>
    %cst_6 = arith.constant dense<0.000000e+00> : vector<16x64xf32>
    %11 = tpu.matmul %9, %10, %cst_6 {dimension_numbers = #tpu.dot_dimension_numbers<[1], [0], [0], [1], [0, 0, 1, 1], [], []>} : vector<16x32xbf16>, vector<32x64xbf16>, vector<16x64xf32> -> vector<16x64xf32>
    %12 = arith.addf %7, %11 : vector<16x64xf32>
    %13 = vector.extract_strided_slice %1 {offsets = [2, 0], sizes = [16, 32], strides = [1, 1]} : vector<18x32xf32> to vector<16x32xf32>
    %14 = arith.truncf %13 : vector<16x32xf32> to vector<16x32xbf16>
    %c64 = arith.constant 64 : index
    %c0_7 = arith.constant 0 : index
    %15 = vector.load %arg2[%c64, %c0_7] : memref<96x64xbf16, #tpu.memory_space<vmem>>, vector<32x64xbf16>
    %cst_8 = arith.constant dense<0.000000e+00> : vector<16x64xf32>
    %16 = tpu.matmul %14, %15, %cst_8 {dimension_numbers = #tpu.dot_dimension_numbers<[1], [0], [0], [1], [0, 0, 1, 1], [], []>} : vector<16x32xbf16>, vector<32x64xbf16>, vector<16x64xf32> -> vector<16x64xf32>
    %17 = arith.addf %12, %16 : vector<16x64xf32>
    %c0_9 = arith.constant 0 : index
    %c0_10 = arith.constant 0 : index
    %18 = vector.load %arg3[%c0_9, %c0_10] : memref<1x64xf32, #tpu.memory_space<vmem>>, vector<1x64xf32>
    %19 = vector.broadcast %18 : vector<1x64xf32> to vector<16x64xf32>
    %20 = arith.addf %17, %19 : vector<16x64xf32>
    %21 = arith.mulf %20, %20 : vector<16x64xf32>
    %22 = arith.mulf %20, %21 : vector<16x64xf32>
    %cst_11 = arith.constant 4.471500e-02 : f32
    %23 = vector.broadcast %cst_11 : f32 to vector<16x64xf32>
    %24 = arith.mulf %23, %22 : vector<16x64xf32>
    %25 = arith.addf %20, %24 : vector<16x64xf32>
    %cst_12 = arith.constant 0.797884583 : f32
    %26 = vector.broadcast %cst_12 : f32 to vector<16x64xf32>
    %27 = arith.mulf %26, %25 : vector<16x64xf32>
    %28 = math.tanh %27 : vector<16x64xf32>
    %cst_13 = arith.constant 1.000000e+00 : f32
    %29 = vector.broadcast %cst_13 : f32 to vector<16x64xf32>
    %30 = arith.addf %29, %28 : vector<16x64xf32>
    %cst_14 = arith.constant 5.000000e-01 : f32
    %31 = vector.broadcast %cst_14 : f32 to vector<16x64xf32>
    %32 = arith.mulf %31, %30 : vector<16x64xf32>
    %33 = arith.mulf %20, %32 : vector<16x64xf32>
    %c0_15 = arith.constant 0 : index
    %c0_16 = arith.constant 0 : index
    %c0_17 = arith.constant 0 : index
    %34 = vector.load %arg4[%c0_15, %c0_16, %c0_17] : memref<1x16x64xf32, #tpu.memory_space<vmem>>, vector<1x16x64xf32>
    %35 = vector.shape_cast %34 : vector<1x16x64xf32> to vector<16x64xf32>
    %36 = vector.shape_cast %33 : vector<16x64xf32> to vector<1x16x64xf32>
    tpu.vector_store %arg4[%c0_15, %c0_16, %c0_17], %36 {strides = array<i32>} : memref<1x16x64xf32, #tpu.memory_space<vmem>>, vector<1x16x64xf32>,
    return
  }
  func.func @transform_0(%arg0: i32) -> (i32, i32, i32) {
    %c0_i32 = arith.constant 0 : i32
    %c0_i32_0 = arith.constant 0 : i32
    %c0_i32_1 = arith.constant 0 : i32
    return %arg0, %c0_i32, %c0_i32_0 : i32, i32, i32
  }
  func.func @transform_1(%arg0: i32) -> (i32, i32) {
    %c0_i32 = arith.constant 0 : i32
    %c0_i32_0 = arith.constant 0 : i32
    %c0_i32_1 = arith.constant 0 : i32
    return %c0_i32, %c0_i32_0 : i32, i32
  }
  func.func @transform_2(%arg0: i32) -> (i32, i32) {
    %c0_i32 = arith.constant 0 : i32
    %c0_i32_0 = arith.constant 0 : i32
    %c0_i32_1 = arith.constant 0 : i32
    return %c0_i32, %c0_i32_0 : i32, i32
  }
  func.func @transform_3(%arg0: i32) -> (i32, i32, i32) {
    %c0_i32 = arith.constant 0 : i32
    %c0_i32_0 = arith.constant 0 : i32
    %c0_i32_1 = arith.constant 0 : i32
    return %arg0, %c0_i32, %c0_i32_0 : i32, i32, i32
  }
}

module attributes {stable_mosaic.version = 11 : i64} {
  func.func @_conv_s2_gelu_pos_kernel(%arg0: i32, %arg1: memref<1x9x128xf32, #tpu.memory_space<vmem>>, %arg2: memref<192x64xbf16, #tpu.memory_space<vmem>>, %arg3: memref<1x64xf32, #tpu.memory_space<vmem>>, %arg4: memref<8x64xf32, #tpu.memory_space<vmem>>, %arg5: memref<1x8x64xf32, #tpu.memory_space<vmem>>) attributes {dimension_semantics = [#tpu.dimension_semantics<parallel>], iteration_bounds = array<i64: 2>, scalar_prefetch = 0 : i64, scratch_operands = 0 : i64, tpu.core_type = #tpu.core_type<tc>, window_params = [{transform_indices = @transform_0, window_bounds = array<i64: 1, 9, 128>}, {pipeline_mode = #tpu.pipeline_mode<synchronous>, transform_indices = @transform_1, window_bounds = array<i64: 192, 64>}, {pipeline_mode = #tpu.pipeline_mode<synchronous>, transform_indices = @transform_2, window_bounds = array<i64: 1, 64>}, {pipeline_mode = #tpu.pipeline_mode<synchronous>, transform_indices = @transform_3, window_bounds = array<i64: 8, 64>}, {transform_indices = @transform_4, window_bounds = array<i64: 1, 8, 64>}]} {
    %c0 = arith.constant 0 : index
    %c0_0 = arith.constant 0 : index
    %c0_1 = arith.constant 0 : index
    %0 = vector.load %arg1[%c0, %c0_0, %c0_1] : memref<1x9x128xf32, #tpu.memory_space<vmem>>, vector<1x9x128xf32>
    %1 = vector.shape_cast %0 : vector<1x9x128xf32> to vector<9x128xf32>
    %2 = vector.extract_strided_slice %1 {offsets = [0, 0], sizes = [8, 64], strides = [1, 1]} : vector<9x128xf32> to vector<8x64xf32>
    %3 = arith.truncf %2 : vector<8x64xf32> to vector<8x64xbf16>
    %4 = vector.extract_strided_slice %1 {offsets = [0, 64], sizes = [8, 64], strides = [1, 1]} : vector<9x128xf32> to vector<8x64xf32>
    %5 = arith.truncf %4 : vector<8x64xf32> to vector<8x64xbf16>
    %6 = vector.extract_strided_slice %1 {offsets = [1, 0], sizes = [8, 64], strides = [1, 1]} : vector<9x128xf32> to vector<8x64xf32>
    %7 = arith.truncf %6 : vector<8x64xf32> to vector<8x64xbf16>
    %c0_2 = arith.constant 0 : index
    %c0_3 = arith.constant 0 : index
    %8 = vector.load %arg2[%c0_2, %c0_3] : memref<192x64xbf16, #tpu.memory_space<vmem>>, vector<64x64xbf16>
    %cst = arith.constant dense<0.000000e+00> : vector<8x64xf32>
    %9 = tpu.matmul %3, %8, %cst {dimension_numbers = #tpu.dot_dimension_numbers<[1], [0], [0], [1], [0, 0, 1, 1], [], []>} : vector<8x64xbf16>, vector<64x64xbf16>, vector<8x64xf32> -> vector<8x64xf32>
    %c64 = arith.constant 64 : index
    %c0_4 = arith.constant 0 : index
    %10 = vector.load %arg2[%c64, %c0_4] : memref<192x64xbf16, #tpu.memory_space<vmem>>, vector<64x64xbf16>
    %cst_5 = arith.constant dense<0.000000e+00> : vector<8x64xf32>
    %11 = tpu.matmul %5, %10, %cst_5 {dimension_numbers = #tpu.dot_dimension_numbers<[1], [0], [0], [1], [0, 0, 1, 1], [], []>} : vector<8x64xbf16>, vector<64x64xbf16>, vector<8x64xf32> -> vector<8x64xf32>
    %12 = arith.addf %9, %11 : vector<8x64xf32>
    %c128 = arith.constant 128 : index
    %c0_6 = arith.constant 0 : index
    %13 = vector.load %arg2[%c128, %c0_6] : memref<192x64xbf16, #tpu.memory_space<vmem>>, vector<64x64xbf16>
    %cst_7 = arith.constant dense<0.000000e+00> : vector<8x64xf32>
    %14 = tpu.matmul %7, %13, %cst_7 {dimension_numbers = #tpu.dot_dimension_numbers<[1], [0], [0], [1], [0, 0, 1, 1], [], []>} : vector<8x64xbf16>, vector<64x64xbf16>, vector<8x64xf32> -> vector<8x64xf32>
    %15 = arith.addf %12, %14 : vector<8x64xf32>
    %c0_8 = arith.constant 0 : index
    %c0_9 = arith.constant 0 : index
    %16 = vector.load %arg3[%c0_8, %c0_9] : memref<1x64xf32, #tpu.memory_space<vmem>>, vector<1x64xf32>
    %17 = vector.broadcast %16 : vector<1x64xf32> to vector<8x64xf32>
    %18 = arith.addf %15, %17 : vector<8x64xf32>
    %19 = arith.mulf %18, %18 : vector<8x64xf32>
    %20 = arith.mulf %18, %19 : vector<8x64xf32>
    %cst_10 = arith.constant 4.471500e-02 : f32
    %21 = vector.broadcast %cst_10 : f32 to vector<8x64xf32>
    %22 = arith.mulf %21, %20 : vector<8x64xf32>
    %23 = arith.addf %18, %22 : vector<8x64xf32>
    %cst_11 = arith.constant 0.797884583 : f32
    %24 = vector.broadcast %cst_11 : f32 to vector<8x64xf32>
    %25 = arith.mulf %24, %23 : vector<8x64xf32>
    %26 = math.tanh %25 : vector<8x64xf32>
    %cst_12 = arith.constant 1.000000e+00 : f32
    %27 = vector.broadcast %cst_12 : f32 to vector<8x64xf32>
    %28 = arith.addf %27, %26 : vector<8x64xf32>
    %cst_13 = arith.constant 5.000000e-01 : f32
    %29 = vector.broadcast %cst_13 : f32 to vector<8x64xf32>
    %30 = arith.mulf %29, %28 : vector<8x64xf32>
    %31 = arith.mulf %18, %30 : vector<8x64xf32>
    %c0_14 = arith.constant 0 : index
    %c0_15 = arith.constant 0 : index
    %32 = vector.load %arg4[%c0_14, %c0_15] : memref<8x64xf32, #tpu.memory_space<vmem>>, vector<8x64xf32>
    %33 = arith.addf %31, %32 : vector<8x64xf32>
    %c0_16 = arith.constant 0 : index
    %c0_17 = arith.constant 0 : index
    %c0_18 = arith.constant 0 : index
    %34 = vector.load %arg5[%c0_16, %c0_17, %c0_18] : memref<1x8x64xf32, #tpu.memory_space<vmem>>, vector<1x8x64xf32>
    %35 = vector.shape_cast %34 : vector<1x8x64xf32> to vector<8x64xf32>
    %36 = vector.shape_cast %33 : vector<8x64xf32> to vector<1x8x64xf32>
    tpu.vector_store %arg5[%c0_16, %c0_17, %c0_18], %36 {strides = array<i32>} : memref<1x8x64xf32, #tpu.memory_space<vmem>>, vector<1x8x64xf32>,
    return
  }
  func.func @transform_0(%arg0: i32) -> (i32, i32, i32) {
    %c0_i32 = arith.constant 0 : i32
    %c0_i32_0 = arith.constant 0 : i32
    %c0_i32_1 = arith.constant 0 : i32
    return %arg0, %c0_i32, %c0_i32_0 : i32, i32, i32
  }
  func.func @transform_1(%arg0: i32) -> (i32, i32) {
    %c0_i32 = arith.constant 0 : i32
    %c0_i32_0 = arith.constant 0 : i32
    %c0_i32_1 = arith.constant 0 : i32
    return %c0_i32, %c0_i32_0 : i32, i32
  }
  func.func @transform_2(%arg0: i32) -> (i32, i32) {
    %c0_i32 = arith.constant 0 : i32
    %c0_i32_0 = arith.constant 0 : i32
    %c0_i32_1 = arith.constant 0 : i32
    return %c0_i32, %c0_i32_0 : i32, i32
  }
  func.func @transform_3(%arg0: i32) -> (i32, i32) {
    %c0_i32 = arith.constant 0 : i32
    %c0_i32_0 = arith.constant 0 : i32
    %c0_i32_1 = arith.constant 0 : i32
    return %c0_i32, %c0_i32_0 : i32, i32
  }
  func.func @transform_4(%arg0: i32) -> (i32, i32, i32) {
    %c0_i32 = arith.constant 0 : i32
    %c0_i32_0 = arith.constant 0 : i32
    %c0_i32_1 = arith.constant 0 : i32
    return %arg0, %c0_i32, %c0_i32_0 : i32, i32, i32
  }
}

module attributes {stable_mosaic.version = 11 : i64} {
  func.func @_encoder_layer_kernel(%arg0: i32, %arg1: memref<1x8x64xf32, #tpu.memory_space<vmem>>, %arg2: memref<1x64xf32, #tpu.memory_space<vmem>>, %arg3: memref<1x64xf32, #tpu.memory_space<vmem>>, %arg4: memref<64x192xbf16, #tpu.memory_space<vmem>>, %arg5: memref<1x192xf32, #tpu.memory_space<vmem>>, %arg6: memref<64x64xbf16, #tpu.memory_space<vmem>>, %arg7: memref<1x64xf32, #tpu.memory_space<vmem>>, %arg8: memref<1x64xf32, #tpu.memory_space<vmem>>, %arg9: memref<1x64xf32, #tpu.memory_space<vmem>>, %arg10: memref<64x128xbf16, #tpu.memory_space<vmem>>, %arg11: memref<1x128xf32, #tpu.memory_space<vmem>>, %arg12: memref<128x64xbf16, #tpu.memory_space<vmem>>, %arg13: memref<1x64xf32, #tpu.memory_space<vmem>>, %arg14: memref<1x8x64xf32, #tpu.memory_space<vmem>>) attributes {dimension_semantics = [#tpu.dimension_semantics<parallel>], iteration_bounds = array<i64: 2>, scalar_prefetch = 0 : i64, scratch_operands = 0 : i64, tpu.core_type = #tpu.core_type<tc>, window_params = [{transform_indices = @transform_0, window_bounds = array<i64: 1, 8, 64>}, {pipeline_mode = #tpu.pipeline_mode<synchronous>, transform_indices = @transform_1, window_bounds = array<i64: 1, 64>}, {pipeline_mode = #tpu.pipeline_mode<synchronous>, transform_indices = @transform_2, window_bounds = array<i64: 1, 64>}, {pipeline_mode = #tpu.pipeline_mode<synchronous>, transform_indices = @transform_3, window_bounds = array<i64: 64, 192>}, {pipeline_mode = #tpu.pipeline_mode<synchronous>, transform_indices = @transform_4, window_bounds = array<i64: 1, 192>}, {pipeline_mode = #tpu.pipeline_mode<synchronous>, transform_indices = @transform_5, window_bounds = array<i64: 64, 64>}, {pipeline_mode = #tpu.pipeline_mode<synchronous>, transform_indices = @transform_6, window_bounds = array<i64: 1, 64>}, {pipeline_mode = #tpu.pipeline_mode<synchronous>, transform_indices = @transform_7, window_bounds = array<i64: 1, 64>}, {pipeline_mode = #tpu.pipeline_mode<synchronous>, transform_indices = @transform_8, window_bounds = array<i64: 1, 64>}, {pipeline_mode = #tpu.pipeline_mode<synchronous>, transform_indices = @transform_9, window_bounds = array<i64: 64, 128>}, {pipeline_mode = #tpu.pipeline_mode<synchronous>, transform_indices = @transform_10, window_bounds = array<i64: 1, 128>}, {pipeline_mode = #tpu.pipeline_mode<synchronous>, transform_indices = @transform_11, window_bounds = array<i64: 128, 64>}, {pipeline_mode = #tpu.pipeline_mode<synchronous>, transform_indices = @transform_12, window_bounds = array<i64: 1, 64>}, {transform_indices = @transform_13, window_bounds = array<i64: 1, 8, 64>}]} {
    %c0 = arith.constant 0 : index
    %c0_0 = arith.constant 0 : index
    %c0_1 = arith.constant 0 : index
    %0 = vector.load %arg1[%c0, %c0_0, %c0_1] : memref<1x8x64xf32, #tpu.memory_space<vmem>>, vector<1x8x64xf32>
    %1 = vector.shape_cast %0 : vector<1x8x64xf32> to vector<8x64xf32>
    %c0_2 = arith.constant 0 : index
    %c0_3 = arith.constant 0 : index
    %2 = vector.load %arg2[%c0_2, %c0_3] : memref<1x64xf32, #tpu.memory_space<vmem>>, vector<1x64xf32>
    %c0_4 = arith.constant 0 : index
    %c0_5 = arith.constant 0 : index
    %3 = vector.load %arg3[%c0_4, %c0_5] : memref<1x64xf32, #tpu.memory_space<vmem>>, vector<1x64xf32>
    %cst = arith.constant dense<0.000000e+00> : vector<8xf32>
    %4 = vector.multi_reduction <add>, %1, %cst [1] : vector<8x64xf32> to vector<8xf32>
    %5 = vector.shape_cast %4 : vector<8xf32> to vector<8x1xf32>
    %cst_6 = arith.constant 6.400000e+01 : f32
    %6 = vector.broadcast %cst_6 : f32 to vector<8x1xf32>
    %7 = arith.divf %5, %6 : vector<8x1xf32>
    %8 = vector.broadcast %7 : vector<8x1xf32> to vector<8x64xf32>
    %9 = arith.subf %1, %8 : vector<8x64xf32>
    %10 = arith.mulf %9, %9 : vector<8x64xf32>
    %cst_7 = arith.constant dense<0.000000e+00> : vector<8xf32>
    %11 = vector.multi_reduction <add>, %10, %cst_7 [1] : vector<8x64xf32> to vector<8xf32>
    %12 = vector.shape_cast %11 : vector<8xf32> to vector<8x1xf32>
    %cst_8 = arith.constant 6.400000e+01 : f32
    %13 = vector.broadcast %cst_8 : f32 to vector<8x1xf32>
    %14 = arith.divf %12, %13 : vector<8x1xf32>
    %cst_9 = arith.constant 9.99999974E-6 : f32
    %15 = vector.broadcast %cst_9 : f32 to vector<8x1xf32>
    %16 = arith.addf %14, %15 : vector<8x1xf32>
    %17 = math.rsqrt %16 : vector<8x1xf32>
    %18 = vector.broadcast %17 : vector<8x1xf32> to vector<8x64xf32>
    %19 = arith.mulf %9, %18 : vector<8x64xf32>
    %20 = vector.broadcast %2 : vector<1x64xf32> to vector<8x64xf32>
    %21 = arith.mulf %19, %20 : vector<8x64xf32>
    %22 = vector.broadcast %3 : vector<1x64xf32> to vector<8x64xf32>
    %23 = arith.addf %21, %22 : vector<8x64xf32>
    %24 = arith.truncf %23 : vector<8x64xf32> to vector<8x64xbf16>
    %c0_10 = arith.constant 0 : index
    %c0_11 = arith.constant 0 : index
    %25 = vector.load %arg4[%c0_10, %c0_11] : memref<64x192xbf16, #tpu.memory_space<vmem>>, vector<64x192xbf16>
    %cst_12 = arith.constant dense<0.000000e+00> : vector<8x192xf32>
    %26 = tpu.matmul %24, %25, %cst_12 {dimension_numbers = #tpu.dot_dimension_numbers<[1], [0], [0], [1], [0, 0, 1, 1], [], []>} : vector<8x64xbf16>, vector<64x192xbf16>, vector<8x192xf32> -> vector<8x192xf32>
    %c0_13 = arith.constant 0 : index
    %c0_14 = arith.constant 0 : index
    %27 = vector.load %arg5[%c0_13, %c0_14] : memref<1x192xf32, #tpu.memory_space<vmem>>, vector<1x192xf32>
    %28 = vector.broadcast %27 : vector<1x192xf32> to vector<8x192xf32>
    %29 = arith.addf %26, %28 : vector<8x192xf32>
    %30 = vector.extract_strided_slice %29 {offsets = [0, 0], sizes = [8, 16], strides = [1, 1]} : vector<8x192xf32> to vector<8x16xf32>
    %cst_15 = arith.constant 2.500000e-01 : f32
    %31 = vector.broadcast %cst_15 : f32 to vector<8x16xf32>
    %32 = arith.mulf %30, %31 : vector<8x16xf32>
    %33 = arith.truncf %32 : vector<8x16xf32> to vector<8x16xbf16>
    %34 = vector.extract_strided_slice %29 {offsets = [0, 64], sizes = [8, 16], strides = [1, 1]} : vector<8x192xf32> to vector<8x16xf32>
    %35 = arith.truncf %34 : vector<8x16xf32> to vector<8x16xbf16>
    %36 = vector.extract_strided_slice %29 {offsets = [0, 128], sizes = [8, 16], strides = [1, 1]} : vector<8x192xf32> to vector<8x16xf32>
    %37 = arith.truncf %36 : vector<8x16xf32> to vector<8x16xbf16>
    %cst_16 = arith.constant dense<0.000000e+00> : vector<8x8xf32>
    %38 = tpu.matmul %33, %35, %cst_16 {dimension_numbers = #tpu.dot_dimension_numbers<[1], [1], [0], [0], [0, 0, 1, 0], [], []>} : vector<8x16xbf16>, vector<8x16xbf16>, vector<8x8xf32> -> vector<8x8xf32>
    %cst_17 = arith.constant dense<0xFF800000> : vector<8xf32>
    %39 = vector.multi_reduction <maximumf>, %38, %cst_17 [1] : vector<8x8xf32> to vector<8xf32>
    %40 = vector.shape_cast %39 : vector<8xf32> to vector<8x1xf32>
    %41 = vector.broadcast %40 : vector<8x1xf32> to vector<8x8xf32>
    %42 = arith.subf %38, %41 : vector<8x8xf32>
    %43 = math.exp %42 : vector<8x8xf32>
    %cst_18 = arith.constant dense<0.000000e+00> : vector<8xf32>
    %44 = vector.multi_reduction <add>, %43, %cst_18 [1] : vector<8x8xf32> to vector<8xf32>
    %45 = vector.shape_cast %44 : vector<8xf32> to vector<8x1xf32>
    %46 = tpu.reciprocal %45 {approx = true} : vector<8x1xf32> -> vector<8x1xf32>
    %47 = vector.broadcast %46 : vector<8x1xf32> to vector<8x8xf32>
    %48 = arith.mulf %43, %47 : vector<8x8xf32>
    %49 = arith.truncf %48 : vector<8x8xf32> to vector<8x8xbf16>
    %cst_19 = arith.constant dense<0.000000e+00> : vector<8x16xf32>
    %50 = tpu.matmul %49, %37, %cst_19 {dimension_numbers = #tpu.dot_dimension_numbers<[1], [0], [0], [1], [0, 0, 1, 1], [], []>} : vector<8x8xbf16>, vector<8x16xbf16>, vector<8x16xf32> -> vector<8x16xf32>
    %51 = vector.extract_strided_slice %29 {offsets = [0, 16], sizes = [8, 16], strides = [1, 1]} : vector<8x192xf32> to vector<8x16xf32>
    %cst_20 = arith.constant 2.500000e-01 : f32
    %52 = vector.broadcast %cst_20 : f32 to vector<8x16xf32>
    %53 = arith.mulf %51, %52 : vector<8x16xf32>
    %54 = arith.truncf %53 : vector<8x16xf32> to vector<8x16xbf16>
    %55 = vector.extract_strided_slice %29 {offsets = [0, 80], sizes = [8, 16], strides = [1, 1]} : vector<8x192xf32> to vector<8x16xf32>
    %56 = arith.truncf %55 : vector<8x16xf32> to vector<8x16xbf16>
    %57 = vector.extract_strided_slice %29 {offsets = [0, 144], sizes = [8, 16], strides = [1, 1]} : vector<8x192xf32> to vector<8x16xf32>
    %58 = arith.truncf %57 : vector<8x16xf32> to vector<8x16xbf16>
    %cst_21 = arith.constant dense<0.000000e+00> : vector<8x8xf32>
    %59 = tpu.matmul %54, %56, %cst_21 {dimension_numbers = #tpu.dot_dimension_numbers<[1], [1], [0], [0], [0, 0, 1, 0], [], []>} : vector<8x16xbf16>, vector<8x16xbf16>, vector<8x8xf32> -> vector<8x8xf32>
    %cst_22 = arith.constant dense<0xFF800000> : vector<8xf32>
    %60 = vector.multi_reduction <maximumf>, %59, %cst_22 [1] : vector<8x8xf32> to vector<8xf32>
    %61 = vector.shape_cast %60 : vector<8xf32> to vector<8x1xf32>
    %62 = vector.broadcast %61 : vector<8x1xf32> to vector<8x8xf32>
    %63 = arith.subf %59, %62 : vector<8x8xf32>
    %64 = math.exp %63 : vector<8x8xf32>
    %cst_23 = arith.constant dense<0.000000e+00> : vector<8xf32>
    %65 = vector.multi_reduction <add>, %64, %cst_23 [1] : vector<8x8xf32> to vector<8xf32>
    %66 = vector.shape_cast %65 : vector<8xf32> to vector<8x1xf32>
    %67 = tpu.reciprocal %66 {approx = true} : vector<8x1xf32> -> vector<8x1xf32>
    %68 = vector.broadcast %67 : vector<8x1xf32> to vector<8x8xf32>
    %69 = arith.mulf %64, %68 : vector<8x8xf32>
    %70 = arith.truncf %69 : vector<8x8xf32> to vector<8x8xbf16>
    %cst_24 = arith.constant dense<0.000000e+00> : vector<8x16xf32>
    %71 = tpu.matmul %70, %58, %cst_24 {dimension_numbers = #tpu.dot_dimension_numbers<[1], [0], [0], [1], [0, 0, 1, 1], [], []>} : vector<8x8xbf16>, vector<8x16xbf16>, vector<8x16xf32> -> vector<8x16xf32>
    %72 = vector.extract_strided_slice %29 {offsets = [0, 32], sizes = [8, 16], strides = [1, 1]} : vector<8x192xf32> to vector<8x16xf32>
    %cst_25 = arith.constant 2.500000e-01 : f32
    %73 = vector.broadcast %cst_25 : f32 to vector<8x16xf32>
    %74 = arith.mulf %72, %73 : vector<8x16xf32>
    %75 = arith.truncf %74 : vector<8x16xf32> to vector<8x16xbf16>
    %76 = vector.extract_strided_slice %29 {offsets = [0, 96], sizes = [8, 16], strides = [1, 1]} : vector<8x192xf32> to vector<8x16xf32>
    %77 = arith.truncf %76 : vector<8x16xf32> to vector<8x16xbf16>
    %78 = vector.extract_strided_slice %29 {offsets = [0, 160], sizes = [8, 16], strides = [1, 1]} : vector<8x192xf32> to vector<8x16xf32>
    %79 = arith.truncf %78 : vector<8x16xf32> to vector<8x16xbf16>
    %cst_26 = arith.constant dense<0.000000e+00> : vector<8x8xf32>
    %80 = tpu.matmul %75, %77, %cst_26 {dimension_numbers = #tpu.dot_dimension_numbers<[1], [1], [0], [0], [0, 0, 1, 0], [], []>} : vector<8x16xbf16>, vector<8x16xbf16>, vector<8x8xf32> -> vector<8x8xf32>
    %cst_27 = arith.constant dense<0xFF800000> : vector<8xf32>
    %81 = vector.multi_reduction <maximumf>, %80, %cst_27 [1] : vector<8x8xf32> to vector<8xf32>
    %82 = vector.shape_cast %81 : vector<8xf32> to vector<8x1xf32>
    %83 = vector.broadcast %82 : vector<8x1xf32> to vector<8x8xf32>
    %84 = arith.subf %80, %83 : vector<8x8xf32>
    %85 = math.exp %84 : vector<8x8xf32>
    %cst_28 = arith.constant dense<0.000000e+00> : vector<8xf32>
    %86 = vector.multi_reduction <add>, %85, %cst_28 [1] : vector<8x8xf32> to vector<8xf32>
    %87 = vector.shape_cast %86 : vector<8xf32> to vector<8x1xf32>
    %88 = tpu.reciprocal %87 {approx = true} : vector<8x1xf32> -> vector<8x1xf32>
    %89 = vector.broadcast %88 : vector<8x1xf32> to vector<8x8xf32>
    %90 = arith.mulf %85, %89 : vector<8x8xf32>
    %91 = arith.truncf %90 : vector<8x8xf32> to vector<8x8xbf16>
    %cst_29 = arith.constant dense<0.000000e+00> : vector<8x16xf32>
    %92 = tpu.matmul %91, %79, %cst_29 {dimension_numbers = #tpu.dot_dimension_numbers<[1], [0], [0], [1], [0, 0, 1, 1], [], []>} : vector<8x8xbf16>, vector<8x16xbf16>, vector<8x16xf32> -> vector<8x16xf32>
    %93 = vector.extract_strided_slice %29 {offsets = [0, 48], sizes = [8, 16], strides = [1, 1]} : vector<8x192xf32> to vector<8x16xf32>
    %cst_30 = arith.constant 2.500000e-01 : f32
    %94 = vector.broadcast %cst_30 : f32 to vector<8x16xf32>
    %95 = arith.mulf %93, %94 : vector<8x16xf32>
    %96 = arith.truncf %95 : vector<8x16xf32> to vector<8x16xbf16>
    %97 = vector.extract_strided_slice %29 {offsets = [0, 112], sizes = [8, 16], strides = [1, 1]} : vector<8x192xf32> to vector<8x16xf32>
    %98 = arith.truncf %97 : vector<8x16xf32> to vector<8x16xbf16>
    %99 = vector.extract_strided_slice %29 {offsets = [0, 176], sizes = [8, 16], strides = [1, 1]} : vector<8x192xf32> to vector<8x16xf32>
    %100 = arith.truncf %99 : vector<8x16xf32> to vector<8x16xbf16>
    %cst_31 = arith.constant dense<0.000000e+00> : vector<8x8xf32>
    %101 = tpu.matmul %96, %98, %cst_31 {dimension_numbers = #tpu.dot_dimension_numbers<[1], [1], [0], [0], [0, 0, 1, 0], [], []>} : vector<8x16xbf16>, vector<8x16xbf16>, vector<8x8xf32> -> vector<8x8xf32>
    %cst_32 = arith.constant dense<0xFF800000> : vector<8xf32>
    %102 = vector.multi_reduction <maximumf>, %101, %cst_32 [1] : vector<8x8xf32> to vector<8xf32>
    %103 = vector.shape_cast %102 : vector<8xf32> to vector<8x1xf32>
    %104 = vector.broadcast %103 : vector<8x1xf32> to vector<8x8xf32>
    %105 = arith.subf %101, %104 : vector<8x8xf32>
    %106 = math.exp %105 : vector<8x8xf32>
    %cst_33 = arith.constant dense<0.000000e+00> : vector<8xf32>
    %107 = vector.multi_reduction <add>, %106, %cst_33 [1] : vector<8x8xf32> to vector<8xf32>
    %108 = vector.shape_cast %107 : vector<8xf32> to vector<8x1xf32>
    %109 = tpu.reciprocal %108 {approx = true} : vector<8x1xf32> -> vector<8x1xf32>
    %110 = vector.broadcast %109 : vector<8x1xf32> to vector<8x8xf32>
    %111 = arith.mulf %106, %110 : vector<8x8xf32>
    %112 = arith.truncf %111 : vector<8x8xf32> to vector<8x8xbf16>
    %cst_34 = arith.constant dense<0.000000e+00> : vector<8x16xf32>
    %113 = tpu.matmul %112, %100, %cst_34 {dimension_numbers = #tpu.dot_dimension_numbers<[1], [0], [0], [1], [0, 0, 1, 1], [], []>} : vector<8x8xbf16>, vector<8x16xbf16>, vector<8x16xf32> -> vector<8x16xf32>
    %114 = tpu.concatenate %50, %71, %92, %113 in 1 : vector<8x16xf32>, vector<8x16xf32>, vector<8x16xf32>, vector<8x16xf32> -> vector<8x64xf32>
    %115 = arith.truncf %114 : vector<8x64xf32> to vector<8x64xbf16>
    %c0_35 = arith.constant 0 : index
    %c0_36 = arith.constant 0 : index
    %116 = vector.load %arg6[%c0_35, %c0_36] : memref<64x64xbf16, #tpu.memory_space<vmem>>, vector<64x64xbf16>
    %cst_37 = arith.constant dense<0.000000e+00> : vector<8x64xf32>
    %117 = tpu.matmul %115, %116, %cst_37 {dimension_numbers = #tpu.dot_dimension_numbers<[1], [0], [0], [1], [0, 0, 1, 1], [], []>} : vector<8x64xbf16>, vector<64x64xbf16>, vector<8x64xf32> -> vector<8x64xf32>
    %118 = arith.addf %1, %117 : vector<8x64xf32>
    %c0_38 = arith.constant 0 : index
    %c0_39 = arith.constant 0 : index
    %119 = vector.load %arg7[%c0_38, %c0_39] : memref<1x64xf32, #tpu.memory_space<vmem>>, vector<1x64xf32>
    %120 = vector.broadcast %119 : vector<1x64xf32> to vector<8x64xf32>
    %121 = arith.addf %118, %120 : vector<8x64xf32>
    %c0_40 = arith.constant 0 : index
    %c0_41 = arith.constant 0 : index
    %122 = vector.load %arg8[%c0_40, %c0_41] : memref<1x64xf32, #tpu.memory_space<vmem>>, vector<1x64xf32>
    %c0_42 = arith.constant 0 : index
    %c0_43 = arith.constant 0 : index
    %123 = vector.load %arg9[%c0_42, %c0_43] : memref<1x64xf32, #tpu.memory_space<vmem>>, vector<1x64xf32>
    %cst_44 = arith.constant dense<0.000000e+00> : vector<8xf32>
    %124 = vector.multi_reduction <add>, %121, %cst_44 [1] : vector<8x64xf32> to vector<8xf32>
    %125 = vector.shape_cast %124 : vector<8xf32> to vector<8x1xf32>
    %cst_45 = arith.constant 6.400000e+01 : f32
    %126 = vector.broadcast %cst_45 : f32 to vector<8x1xf32>
    %127 = arith.divf %125, %126 : vector<8x1xf32>
    %128 = vector.broadcast %127 : vector<8x1xf32> to vector<8x64xf32>
    %129 = arith.subf %121, %128 : vector<8x64xf32>
    %130 = arith.mulf %129, %129 : vector<8x64xf32>
    %cst_46 = arith.constant dense<0.000000e+00> : vector<8xf32>
    %131 = vector.multi_reduction <add>, %130, %cst_46 [1] : vector<8x64xf32> to vector<8xf32>
    %132 = vector.shape_cast %131 : vector<8xf32> to vector<8x1xf32>
    %cst_47 = arith.constant 6.400000e+01 : f32
    %133 = vector.broadcast %cst_47 : f32 to vector<8x1xf32>
    %134 = arith.divf %132, %133 : vector<8x1xf32>
    %cst_48 = arith.constant 9.99999974E-6 : f32
    %135 = vector.broadcast %cst_48 : f32 to vector<8x1xf32>
    %136 = arith.addf %134, %135 : vector<8x1xf32>
    %137 = math.rsqrt %136 : vector<8x1xf32>
    %138 = vector.broadcast %137 : vector<8x1xf32> to vector<8x64xf32>
    %139 = arith.mulf %129, %138 : vector<8x64xf32>
    %140 = vector.broadcast %122 : vector<1x64xf32> to vector<8x64xf32>
    %141 = arith.mulf %139, %140 : vector<8x64xf32>
    %142 = vector.broadcast %123 : vector<1x64xf32> to vector<8x64xf32>
    %143 = arith.addf %141, %142 : vector<8x64xf32>
    %144 = arith.truncf %143 : vector<8x64xf32> to vector<8x64xbf16>
    %c0_49 = arith.constant 0 : index
    %c0_50 = arith.constant 0 : index
    %145 = vector.load %arg10[%c0_49, %c0_50] : memref<64x128xbf16, #tpu.memory_space<vmem>>, vector<64x128xbf16>
    %cst_51 = arith.constant dense<0.000000e+00> : vector<8x128xf32>
    %146 = tpu.matmul %144, %145, %cst_51 {dimension_numbers = #tpu.dot_dimension_numbers<[1], [0], [0], [1], [0, 0, 1, 1], [], []>} : vector<8x64xbf16>, vector<64x128xbf16>, vector<8x128xf32> -> vector<8x128xf32>
    %c0_52 = arith.constant 0 : index
    %c0_53 = arith.constant 0 : index
    %147 = vector.load %arg11[%c0_52, %c0_53] : memref<1x128xf32, #tpu.memory_space<vmem>>, vector<1x128xf32>
    %148 = vector.broadcast %147 : vector<1x128xf32> to vector<8x128xf32>
    %149 = arith.addf %146, %148 : vector<8x128xf32>
    %150 = arith.mulf %149, %149 : vector<8x128xf32>
    %151 = arith.mulf %149, %150 : vector<8x128xf32>
    %cst_54 = arith.constant 4.471500e-02 : f32
    %152 = vector.broadcast %cst_54 : f32 to vector<8x128xf32>
    %153 = arith.mulf %152, %151 : vector<8x128xf32>
    %154 = arith.addf %149, %153 : vector<8x128xf32>
    %cst_55 = arith.constant 0.797884583 : f32
    %155 = vector.broadcast %cst_55 : f32 to vector<8x128xf32>
    %156 = arith.mulf %155, %154 : vector<8x128xf32>
    %157 = math.tanh %156 : vector<8x128xf32>
    %cst_56 = arith.constant 1.000000e+00 : f32
    %158 = vector.broadcast %cst_56 : f32 to vector<8x128xf32>
    %159 = arith.addf %158, %157 : vector<8x128xf32>
    %cst_57 = arith.constant 5.000000e-01 : f32
    %160 = vector.broadcast %cst_57 : f32 to vector<8x128xf32>
    %161 = arith.mulf %160, %159 : vector<8x128xf32>
    %162 = arith.mulf %149, %161 : vector<8x128xf32>
    %163 = arith.truncf %162 : vector<8x128xf32> to vector<8x128xbf16>
    %c0_58 = arith.constant 0 : index
    %c0_59 = arith.constant 0 : index
    %164 = vector.load %arg12[%c0_58, %c0_59] : memref<128x64xbf16, #tpu.memory_space<vmem>>, vector<128x64xbf16>
    %cst_60 = arith.constant dense<0.000000e+00> : vector<8x64xf32>
    %165 = tpu.matmul %163, %164, %cst_60 {dimension_numbers = #tpu.dot_dimension_numbers<[1], [0], [0], [1], [0, 0, 1, 1], [], []>} : vector<8x128xbf16>, vector<128x64xbf16>, vector<8x64xf32> -> vector<8x64xf32>
    %c0_61 = arith.constant 0 : index
    %c0_62 = arith.constant 0 : index
    %166 = vector.load %arg13[%c0_61, %c0_62] : memref<1x64xf32, #tpu.memory_space<vmem>>, vector<1x64xf32>
    %167 = vector.broadcast %166 : vector<1x64xf32> to vector<8x64xf32>
    %168 = arith.addf %165, %167 : vector<8x64xf32>
    %169 = arith.addf %121, %168 : vector<8x64xf32>
    %c0_63 = arith.constant 0 : index
    %c0_64 = arith.constant 0 : index
    %c0_65 = arith.constant 0 : index
    %170 = vector.load %arg14[%c0_63, %c0_64, %c0_65] : memref<1x8x64xf32, #tpu.memory_space<vmem>>, vector<1x8x64xf32>
    %171 = vector.shape_cast %170 : vector<1x8x64xf32> to vector<8x64xf32>
    %172 = vector.shape_cast %169 : vector<8x64xf32> to vector<1x8x64xf32>
    tpu.vector_store %arg14[%c0_63, %c0_64, %c0_65], %172 {strides = array<i32>} : memref<1x8x64xf32, #tpu.memory_space<vmem>>, vector<1x8x64xf32>,
    return
  }
  func.func @transform_0(%arg0: i32) -> (i32, i32, i32) {
    %c0_i32 = arith.constant 0 : i32
    %c0_i32_0 = arith.constant 0 : i32
    %c0_i32_1 = arith.constant 0 : i32
    return %arg0, %c0_i32, %c0_i32_0 : i32, i32, i32
  }
  func.func @transform_1(%arg0: i32) -> (i32, i32) {
    %c0_i32 = arith.constant 0 : i32
    %c0_i32_0 = arith.constant 0 : i32
    %c0_i32_1 = arith.constant 0 : i32
    return %c0_i32, %c0_i32_0 : i32, i32
  }
  func.func @transform_2(%arg0: i32) -> (i32, i32) {
    %c0_i32 = arith.constant 0 : i32
    %c0_i32_0 = arith.constant 0 : i32
    %c0_i32_1 = arith.constant 0 : i32
    return %c0_i32, %c0_i32_0 : i32, i32
  }
  func.func @transform_3(%arg0: i32) -> (i32, i32) {
    %c0_i32 = arith.constant 0 : i32
    %c0_i32_0 = arith.constant 0 : i32
    %c0_i32_1 = arith.constant 0 : i32
    return %c0_i32, %c0_i32_0 : i32, i32
  }
  func.func @transform_4(%arg0: i32) -> (i32, i32) {
    %c0_i32 = arith.constant 0 : i32
    %c0_i32_0 = arith.constant 0 : i32
    %c0_i32_1 = arith.constant 0 : i32
    return %c0_i32, %c0_i32_0 : i32, i32
  }
  func.func @transform_5(%arg0: i32) -> (i32, i32) {
    %c0_i32 = arith.constant 0 : i32
    %c0_i32_0 = arith.constant 0 : i32
    %c0_i32_1 = arith.constant 0 : i32
    return %c0_i32, %c0_i32_0 : i32, i32
  }
  func.func @transform_6(%arg0: i32) -> (i32, i32) {
    %c0_i32 = arith.constant 0 : i32
    %c0_i32_0 = arith.constant 0 : i32
    %c0_i32_1 = arith.constant 0 : i32
    return %c0_i32, %c0_i32_0 : i32, i32
  }
  func.func @transform_7(%arg0: i32) -> (i32, i32) {
    %c0_i32 = arith.constant 0 : i32
    %c0_i32_0 = arith.constant 0 : i32
    %c0_i32_1 = arith.constant 0 : i32
    return %c0_i32, %c0_i32_0 : i32, i32
  }
  func.func @transform_8(%arg0: i32) -> (i32, i32) {
    %c0_i32 = arith.constant 0 : i32
    %c0_i32_0 = arith.constant 0 : i32
    %c0_i32_1 = arith.constant 0 : i32
    return %c0_i32, %c0_i32_0 : i32, i32
  }
  func.func @transform_9(%arg0: i32) -> (i32, i32) {
    %c0_i32 = arith.constant 0 : i32
    %c0_i32_0 = arith.constant 0 : i32
    %c0_i32_1 = arith.constant 0 : i32
    return %c0_i32, %c0_i32_0 : i32, i32
  }
  func.func @transform_10(%arg0: i32) -> (i32, i32) {
    %c0_i32 = arith.constant 0 : i32
    %c0_i32_0 = arith.constant 0 : i32
    %c0_i32_1 = arith.constant 0 : i32
    return %c0_i32, %c0_i32_0 : i32, i32
  }
  func.func @transform_11(%arg0: i32) -> (i32, i32) {
    %c0_i32 = arith.constant 0 : i32
    %c0_i32_0 = arith.constant 0 : i32
    %c0_i32_1 = arith.constant 0 : i32
    return %c0_i32, %c0_i32_0 : i32, i32
  }
  func.func @transform_12(%arg0: i32) -> (i32, i32) {
    %c0_i32 = arith.constant 0 : i32
    %c0_i32_0 = arith.constant 0 : i32
    %c0_i32_1 = arith.constant 0 : i32
    return %c0_i32, %c0_i32_0 : i32, i32
  }
  func.func @transform_13(%arg0: i32) -> (i32, i32, i32) {
    %c0_i32 = arith.constant 0 : i32
    %c0_i32_0 = arith.constant 0 : i32
    %c0_i32_1 = arith.constant 0 : i32
    return %arg0, %c0_i32, %c0_i32_0 : i32, i32, i32
  }
}

module attributes {stable_mosaic.version = 11 : i64} {
  func.func @_pool_ln_proj_kernel(%arg0: i32, %arg1: memref<8x128xf32, #tpu.memory_space<vmem>>, %arg2: memref<1x64xf32, #tpu.memory_space<vmem>>, %arg3: memref<1x64xf32, #tpu.memory_space<vmem>>, %arg4: memref<64x64xbf16, #tpu.memory_space<vmem>>, %arg5: memref<1x64xf32, #tpu.memory_space<vmem>>, %arg6: memref<8x64xf32, #tpu.memory_space<vmem>>) attributes {dimension_semantics = [#tpu.dimension_semantics<parallel>], iteration_bounds = array<i64: 1>, scalar_prefetch = 0 : i64, scratch_operands = 0 : i64, tpu.core_type = #tpu.core_type<tc>, window_params = [{transform_indices = @transform_0, window_bounds = array<i64: 8, 128>}, {pipeline_mode = #tpu.pipeline_mode<synchronous>, transform_indices = @transform_1, window_bounds = array<i64: 1, 64>}, {pipeline_mode = #tpu.pipeline_mode<synchronous>, transform_indices = @transform_2, window_bounds = array<i64: 1, 64>}, {pipeline_mode = #tpu.pipeline_mode<synchronous>, transform_indices = @transform_3, window_bounds = array<i64: 64, 64>}, {pipeline_mode = #tpu.pipeline_mode<synchronous>, transform_indices = @transform_4, window_bounds = array<i64: 1, 64>}, {transform_indices = @transform_5, window_bounds = array<i64: 8, 64>}]} {
    %c0 = arith.constant 0 : index
    %c0_0 = arith.constant 0 : index
    %0 = vector.load %arg1[%c0, %c0_0] : memref<8x128xf32, #tpu.memory_space<vmem>>, vector<8x128xf32>
    %1 = vector.extract_strided_slice %0 {offsets = [0, 0], sizes = [8, 64], strides = [1, 1]} : vector<8x128xf32> to vector<8x64xf32>
    %2 = vector.extract_strided_slice %0 {offsets = [0, 64], sizes = [8, 64], strides = [1, 1]} : vector<8x128xf32> to vector<8x64xf32>
    %3 = arith.addf %1, %2 : vector<8x64xf32>
    %cst = arith.constant 5.000000e-01 : f32
    %4 = vector.broadcast %cst : f32 to vector<8x64xf32>
    %5 = arith.mulf %4, %3 : vector<8x64xf32>
    %c0_1 = arith.constant 0 : index
    %c0_2 = arith.constant 0 : index
    %6 = vector.load %arg2[%c0_1, %c0_2] : memref<1x64xf32, #tpu.memory_space<vmem>>, vector<1x64xf32>
    %c0_3 = arith.constant 0 : index
    %c0_4 = arith.constant 0 : index
    %7 = vector.load %arg3[%c0_3, %c0_4] : memref<1x64xf32, #tpu.memory_space<vmem>>, vector<1x64xf32>
    %cst_5 = arith.constant dense<0.000000e+00> : vector<8xf32>
    %8 = vector.multi_reduction <add>, %5, %cst_5 [1] : vector<8x64xf32> to vector<8xf32>
    %9 = vector.shape_cast %8 : vector<8xf32> to vector<8x1xf32>
    %cst_6 = arith.constant 6.400000e+01 : f32
    %10 = vector.broadcast %cst_6 : f32 to vector<8x1xf32>
    %11 = arith.divf %9, %10 : vector<8x1xf32>
    %12 = vector.broadcast %11 : vector<8x1xf32> to vector<8x64xf32>
    %13 = arith.subf %5, %12 : vector<8x64xf32>
    %14 = arith.mulf %13, %13 : vector<8x64xf32>
    %cst_7 = arith.constant dense<0.000000e+00> : vector<8xf32>
    %15 = vector.multi_reduction <add>, %14, %cst_7 [1] : vector<8x64xf32> to vector<8xf32>
    %16 = vector.shape_cast %15 : vector<8xf32> to vector<8x1xf32>
    %cst_8 = arith.constant 6.400000e+01 : f32
    %17 = vector.broadcast %cst_8 : f32 to vector<8x1xf32>
    %18 = arith.divf %16, %17 : vector<8x1xf32>
    %cst_9 = arith.constant 9.99999974E-6 : f32
    %19 = vector.broadcast %cst_9 : f32 to vector<8x1xf32>
    %20 = arith.addf %18, %19 : vector<8x1xf32>
    %21 = math.rsqrt %20 : vector<8x1xf32>
    %22 = vector.broadcast %21 : vector<8x1xf32> to vector<8x64xf32>
    %23 = arith.mulf %13, %22 : vector<8x64xf32>
    %24 = vector.broadcast %6 : vector<1x64xf32> to vector<8x64xf32>
    %25 = arith.mulf %23, %24 : vector<8x64xf32>
    %26 = vector.broadcast %7 : vector<1x64xf32> to vector<8x64xf32>
    %27 = arith.addf %25, %26 : vector<8x64xf32>
    %28 = arith.truncf %27 : vector<8x64xf32> to vector<8x64xbf16>
    %c0_10 = arith.constant 0 : index
    %c0_11 = arith.constant 0 : index
    %29 = vector.load %arg4[%c0_10, %c0_11] : memref<64x64xbf16, #tpu.memory_space<vmem>>, vector<64x64xbf16>
    %cst_12 = arith.constant dense<0.000000e+00> : vector<8x64xf32>
    %30 = tpu.matmul %28, %29, %cst_12 {dimension_numbers = #tpu.dot_dimension_numbers<[1], [0], [0], [1], [0, 0, 1, 1], [], []>} : vector<8x64xbf16>, vector<64x64xbf16>, vector<8x64xf32> -> vector<8x64xf32>
    %c0_13 = arith.constant 0 : index
    %c0_14 = arith.constant 0 : index
    %31 = vector.load %arg5[%c0_13, %c0_14] : memref<1x64xf32, #tpu.memory_space<vmem>>, vector<1x64xf32>
    %32 = vector.broadcast %31 : vector<1x64xf32> to vector<8x64xf32>
    %33 = arith.addf %30, %32 : vector<8x64xf32>
    %c0_15 = arith.constant 0 : index
    %c0_16 = arith.constant 0 : index
    %34 = vector.load %arg6[%c0_15, %c0_16] : memref<8x64xf32, #tpu.memory_space<vmem>>, vector<8x64xf32>
    tpu.vector_store %arg6[%c0_15, %c0_16], %33 {strides = array<i32>} : memref<8x64xf32, #tpu.memory_space<vmem>>, vector<8x64xf32>,
    return
  }
  func.func @transform_0(%arg0: i32) -> (i32, i32) {
    %c0_i32 = arith.constant 0 : i32
    %c0_i32_0 = arith.constant 0 : i32
    return %arg0, %c0_i32 : i32, i32
  }
  func.func @transform_1(%arg0: i32) -> (i32, i32) {
    %c0_i32 = arith.constant 0 : i32
    %c0_i32_0 = arith.constant 0 : i32
    %c0_i32_1 = arith.constant 0 : i32
    return %c0_i32, %c0_i32_0 : i32, i32
  }
  func.func @transform_2(%arg0: i32) -> (i32, i32) {
    %c0_i32 = arith.constant 0 : i32
    %c0_i32_0 = arith.constant 0 : i32
    %c0_i32_1 = arith.constant 0 : i32
    return %c0_i32, %c0_i32_0 : i32, i32
  }
  func.func @transform_3(%arg0: i32) -> (i32, i32) {
    %c0_i32 = arith.constant 0 : i32
    %c0_i32_0 = arith.constant 0 : i32
    %c0_i32_1 = arith.constant 0 : i32
    return %c0_i32, %c0_i32_0 : i32, i32
  }
  func.func @transform_4(%arg0: i32) -> (i32, i32) {
    %c0_i32 = arith.constant 0 : i32
    %c0_i32_0 = arith.constant 0 : i32
    %c0_i32_1 = arith.constant 0 : i32
    return %c0_i32, %c0_i32_0 : i32, i32
  }
  func.func @transform_5(%arg0: i32) -> (i32, i32) {
    %c0_i32 = arith.constant 0 : i32
    %c0_i32_0 = arith.constant 0 : i32
    return %arg0, %c0_i32 : i32, i32
  }
}

</mosaic_0001>

<bundles_post_ra>
// kernel: qwen2_audio_forward.5
= control target key start
LH: loop header
LB: loop body
LE: loop exit
PB: predicated region body
PF: predicated region fallthrough
CT: control target
= control target key end

     0   :  { %s568_s12 = smov 0   ;;  %s616_s0 = inlined_call_operand.vmem [shape: f32[2,18,32], index: 0, kind: input, shape index: {}]   ;;  %s617_s1 = inlined_call_operand.vmem [shape: bf16[96,64], index: 1, kind: input, shape index: {}]   ;;  %s618_s2 = inlined_call_operand.vmem [shape: f32[1,64], index: 2, kind: input, shape index: {}]   ;;  %s619_s3 = inlined_call_operand.vmem [shape: f32[2,16,64], index: 3, kind: output, shape index: {}]  }
   0x1 LB: > { %s463_s13 = sadd.s32 4294967295, %s544_s12   ;;  %p467_p0 = scmp.ge.s32.totalorder %s544_s12, 1  ;;  %s544_s12 = sphi %s568_s12, %s13_s12  }
   0x2   : > { %p137_p1 = scmp.lt.s32.totalorder %s544_s12, 3 }
   0x4   : > { %p138_p2 = pnand %p467_p0, %p137_p1 }
   0x5   : > { %v528_v0 = vld [vmem:[%s617_s1 + $0x10] sm:$0xff] (!%p138_p2)   ;;  %v546_v1 = vmov (!%p138_p2), 0.0   ;;  %v529_v2 = vld [vmem:[%s617_s1] sm:$0xff] (!%p138_p2)   ;;  %v530_v3 = vld [vmem:[%s617_s1 + $0x18] sm:$0xff] (!%p138_p2)   ;;  %vm547_vm0 = vmmov (!%p138_p2), 0   ;;  %p161_p3 = scmp.lt.s32.totalorder (!%p138_p2), %s463_s13, 1 }
   0x6   : > { %141 = sbr.rel (%p138_p2) target bundleno = 281 (0x119), region = 32  ;;  %493 = vmatprep.subr.bf16.mxu0 (!%p138_p2), %v546_v1  ;;  %501 = vmatprep.subr.bf16.mxu1 (!%p138_p2), %v546_v1  ;;  %v531_v4 = vld [vmem:[%s617_s1 + $0x8] sm:$0xff] (!%p138_p2)   ;;  %vm210_vm1 = vcmask (!%p138_p2), 261120   ;;  %vm185_vm2 = vsmask.f32 (!%p138_p2), 7424  ;;  %v532_v16 = vld [vmem:[%s617_s1 + $0x20] sm:$0xff] (!%p138_p2)  }
   0x7   : > { %494 = vmatpush3.bf16.msra.mxu0 (!%p138_p2), %v528_v0  ;;  %497 = vmatprep.mubr.msk.bf16.mxu0 (!%p138_p2), %vm547_vm0, %v546_v1  ;;  %v533_v18 = vld [vmem:[%s617_s1 + $0x28] sm:$0xff] (!%p138_p2)   ;;  %vm316_vm3 = vcmask (!%p138_p2), 1046528   ;;  %v480_v33 = vld [vmem:[%s618_s2] ss:$0 sm:$0xff] (!%p138_p2)  ;;  %vm405_vm4 = vcmask (!%p138_p2), 523264  }
   0x8   : > { %502 = vmatpush3.bf16.msra.mxu1 (!%p138_p2), %v529_v2  ;;  %495 = vmatprep.subr.bf16.mxu0 (!%p138_p2), %v546_v1 }
   0x9   : > { %503 = vmatprep.subr.bf16.mxu1 (!%p138_p2), %v546_v1  ;;  %505 = vmatprep.mubr.msk.bf16.mxu1 (!%p138_p2), %vm547_vm0, %v546_v1 }
   0xb   : > { %496 = vmatpush3.bf16.msra.mxu0 (!%p138_p2), %v530_v3 }
   0xc   : > { %504 = vmatpush3.bf16.msra.mxu1 (!%p138_p2), %v531_v4  ;;  %509 = vmatprep.subr.bf16.mxu0 (!%p138_p2), %v546_v1 }
   0xd   : > { %s621_s13 = smov (!%p161_p3, %s463_s13), 1 }
   0xe   : > { %s517_s22 = smul.u32 24, %s621_s13  ;;  %s483_s5 = sshll.u32 %s621_s13, 4 }
   0xf   : > { %s170_s8 = scalar_lea.vmem %s619_s3, %s483_s5 }
  0x10   : > { %s165_s25 = scalar_lea.vmem %s616_s0, %s517_s22 }
  0x11   : > { %v172_v5 = vld [vmem:[%s165_s25] sm:$0xff]  ;;  %v173_v6 = vld [vmem:[%s165_s25 + $0x8] sm:$0xff]  ;;  %v174_v7 = vld [vmem:[%s165_s25 + $0x10] sm:$0x3] }
  0x12   : > { %v175_v8 = vpack.c.bf16 %v173_v6, %v172_v5  ;;  %v180_v9 = vpack.c.bf16 %v174_v7, %v174_v7 }
  0x14   : > { %v187_v10 = vshrl.u32 %v175_v8, 16  ;;  %v189_v11 = vshll.u32 %v175_v8, 16  ;;  %v194_v12 = vshll.u32 %v180_v9, 16  ;;  %506 = vmatmul.mubr.msk.bf16.vlgmr.msra.gmra.mrb[0].mxu1 %vm210_vm1, %v175_v8  ;;  %v317_v19 = vrot.slane %v175_v8, 1 }
  0x15   : > { %v318_v20 = vrot.slane %v180_v9, 1 }
  0x16   : > { %v191_v13 = vrot.slane %v189_v11, 1  ;;  %v196_v14 = vrot.slane %v194_v12, 1 }
  0x17   : > { %v319_v21 = vsel %vm316_vm3, %v317_v19, %v318_v20 }
  0x18   : > { %v192_v15 = vor.u32 %v191_v13, %v187_v10 }
  0x1a   : > { %v197_v17 = vsel %vm185_vm2, %v192_v15, %v196_v14 }
  0x1b   : > { %498 = vmatmul.mubr.msk.bf16.vlgmr.msra.gmra.mrb[0].mxu0 %vm210_vm1, %v197_v17 }
  0x1c   : > { %510 = vmatpush3.bf16.msra.mxu0 %v532_v16  ;;  %513 = vmatprep.mubr.msk.bf16.mxu0 %vm547_vm0, %v546_v1 }
  0x1d   : > { %511 = vmatprep.subr.bf16.mxu0 %v546_v1 }
  0x20   : > { %512 = vmatpush3.bf16.msra.mxu0 %v533_v18 }
  0x23   : > { %514 = vmatmul.mubr.msk.bf16.vlgmr.msra.gmra.mrb[4].mxu0 %vm210_vm1, %v319_v21 }
  0xe7   : > { %v303_v22 = vpop.f32.mrb[0].mxu1 }
  0xe8   : > { %v507_v23 = vpop.f32.mrb[1].mxu1 }
  0xe9   : > { %v306_v24 = vpop.f32.mrb[2].mxu1 }
  0xea   : > { %v508_v25 = vpop.f32.mrb[3].mxu1 }
  0xee   : > { %v248_v26 = vpop.f32.mrb[0].mxu0 }
  0xef   : > { %v304_v27 = vadd.f32 %v303_v22, %v248_v26  ;;  %v499_v28 = vpop.f32.mrb[1].mxu0 }
  0xf0   : > { %v251_v29 = vpop.f32.mrb[2].mxu0 }
  0xf1   : > { %v307_v30 = vadd.f32 %v306_v24, %v251_v29  ;;  %v500_v31 = vpop.f32.mrb[3].mxu0 }
  0xf6   : > { %v369_v32 = vpop.f32.mrb[4].mxu0 }
  0xf7   : > { %v376_v34 = vadd.f32 %v369_v32, %v304_v27  ;;  %v515_v35 = vpop.f32.mrb[5].mxu0 }
  0xf8   : > { %v372_v36 = vpop.f32.mrb[6].mxu0 }
  0xf9   : > { %v385_v37 = vadd.f32 %v480_v33, %v376_v34  ;;  %v377_v38 = vadd.f32 %v372_v36, %v307_v30  ;;  %v516_v39 = vpop.f32.mrb[7].mxu0 }
  0xfb   : > { %v387_v40 = vmul.f32 %v385_v37, %v385_v37  ;;  %v386_v41 = vadd.f32 %v480_v33, %v377_v38 }
  0xfd   : > { %v389_v42 = vmul.f32 %v387_v40, %v385_v37  ;;  %v388_v43 = vmul.f32 %v386_v41, %v386_v41 }
  0xff   : > { %v391_v44 = vmul.f32 0.044715, %v389_v42  ;;  %v390_v45 = vmul.f32 %v388_v43, %v386_v41 }
 0x101   : > { %v393_v46 = vadd.f32 %v391_v44, %v385_v37  ;;  %v392_v47 = vmul.f32 0.044715, %v390_v45 }
 0x103   : > { %v395_v48 = vmul.f32 0.7978846, %v393_v46  ;;  %v394_v49 = vadd.f32 %v392_v47, %v386_v41 }
 0x105   : > { %534 = vtanh.f32 %v395_v48  ;;  %v396_v50 = vmul.f32 0.7978846, %v394_v49 }
 0x107   : > { %536 = vtanh.f32 %v396_v50 }
 0x10f   : > { %v535_v51 = vpop.eup %534 }
 0x110   : > { %v399_v52 = vadd.f32 1.0, %v535_v51 }
 0x111   : > { %v537_v53 = vpop.eup %536 }
 0x112   : > { %v401_v54 = vmul.f32 0.5, %v399_v52  ;;  %v400_v55 = vadd.f32 1.0, %v537_v53 }
 0x114   : > { %v403_v56 = vmul.f32 %v401_v54, %v385_v37  ;;  %v402_v57 = vmul.f32 0.5, %v400_v55 }
 0x116   : > { %406 = vst.msk [vmem:[%s170_s8] sm:$0xff] %vm405_vm4, %v403_v56  ;;  %v404_v58 = vmul.f32 %v402_v57, %v386_v41 }
 0x118   : > { %407 = vst.msk [vmem:[%s170_s8 + $0x8] sm:$0xff] %vm405_vm4, %v404_v58 }
 0x119 PF: > { %s13_s12 = sadd.s32 1, %s544_s12  }
 0x11a   : > { %p10_p4 = scmp.ge.s32.totalorder %s13_s12, 4  }
 0x11c   :  { %12 = sbr.rel (!%p10_p4) target bundleno = 1 (0x1), region = 62 }

// kernel: qwen2_audio_forward.9
= control target key start
LH: loop header
LB: loop body
LE: loop exit
PB: predicated region body
PF: predicated region fallthrough
CT: control target
= control target key end

     0   :  { %s217_s20 = smov 64   ;;  %s291_s0 = inlined_call_operand.vmem [shape: f32[8,128], index: 0, kind: input, shape index: {}]   ;;  %s292_s1 = inlined_call_operand.vmem [shape: f32[1,64], index: 1, kind: input, shape index: {}]   ;;  %s293_s2 = inlined_call_operand.vmem [shape: f32[1,64], index: 2, kind: input, shape index: {}]   ;;  %s294_s3 = inlined_call_operand.vmem [shape: bf16[64,64], index: 3, kind: input, shape index: {}]   ;;  %s295_s4 = inlined_call_operand.vmem [shape: f32[1,64], index: 4, kind: input, shape index: {}]   ;;  %s296_s5 = inlined_call_operand.hbm [shape: f32[8,64], index: 5, kind: output, shape index: {}]  }
   0x1   :  { %v22_v0 = vld [vmem:[%s291_s0] sm:$0xff] }
   0x2   :  { %24 = vrot.lane.b32.xlu0 %v22_v0, %s217_s20 }
   0x3   :  { %10 = vsyncpa [#allocation3], 0  ;;  %vm31_vm0 = vcmask 523264   ;;  %v187_v10 = vld [vmem:[%s294_s3] sm:$0xff]   ;;  %v218_v11 = vmov 0.0   ;;  %v188_v12 = vld [vmem:[%s294_s3 + $0x8] sm:$0xff]  }
   0x4   :  { %171 = vmatprep.subr.bf16.mxu0 %v218_v11  ;;  %v189_v13 = vld [vmem:[%s294_s3 + $0x10] sm:$0xff]   ;;  %v190_v14 = vld [vmem:[%s294_s3 + $0x18] sm:$0xff]   ;;  %vm219_vm1 = vmmov 0   ;;  %v158_v19 = vld [vmem:[%s292_s1] ss:$0 sm:$0xff]  ;;  %s220_s8 = smov [#allocation2]  }
   0x5   :  { %172 = vmatpush3.bf16.msra.mxu0 %v187_v10  ;;  %179 = vmatprep.mubr.msk.bf16.mxu0 %vm219_vm1, %v218_v11  ;;  %v159_v21 = vld [vmem:[%s293_s2] ss:$0 sm:$0xff]  ;;  %s150_s9 = sshll.u32 %s220_s8, 4  ;;  %s151_s9 = int_to_ptr.vmem [resolvable:$true] %s150_s9 }
   0x6   :  { %173 = vmatprep.subr.bf16.mxu0 %v218_v11  ;;  %v160_v25 = vld [vmem:[%s295_s4] ss:$0 sm:$0xff]  ;;  %s193_s1 = scalar_lea.vmem %s151_s9, 128  ;;  %p198_p1 = scmp.lt.s32.totalorder %s151_s9, %s151_s9 }
   0x7   :  { %p194_p0 = scmp.ne.s32.totalorder %s151_s9, %s193_s1  ;;  %p199_p2 = scmp.lt.s32.totalorder %s193_s1, %s193_s1 }
   0x9   :  { %174 = vmatpush3.bf16.msra.mxu0 %v188_v12  ;;  %p200_p3 = por %p199_p2, %p198_p1 }
   0xa   :  { %175 = vmatprep.subr.bf16.mxu0 %v218_v11 }
   0xb   :  { %p201_p4 = pnand %p200_p3, %p194_p0 }
   0xd   :  { %176 = vmatpush3.bf16.msra.mxu0 %v189_v13 }
   0xe   :  { %177 = vmatprep.subr.bf16.mxu0 %v218_v11 }
  0x11   :  { %178 = vmatpush3.bf16.msra.mxu0 %v190_v14 }
  0x74   :  { %v25_v1 = vpop.permute.xlu0 %24 }
  0x75   :  { %v27_v2 = vadd.f32 %v25_v1, %v22_v0 }
  0x77   :  { %v28_v3 = vmul.f32 0.5, %v27_v2 }
  0x79   :  { %v32_v4 = vsel %vm31_vm0, %v28_v3, 0.0 }
  0x7a   :  { %33 = vadd.xlane.f32.xlu0 %v32_v4 }
 0x107   :  { %v34_v5 = vpop.xlane.xlu0 %33 }
 0x108   :  { %v36_v6 = vmul.f32 0.015625, %v34_v5 }
 0x10a   :  { %v37_v7 = vsub.f32 %v28_v3, %v36_v6 }
 0x10c   :  { %v38_v8 = vmul.f32 %v37_v7, %v37_v7 }
 0x10e   :  { %v39_v9 = vsel %vm31_vm0, %v38_v8, 0.0 }
 0x10f   :  { %40 = vadd.xlane.f32.xlu1 %v39_v9 }
 0x19c   :  { %v41_v15 = vpop.xlane.xlu1 %40 }
 0x19d   :  { %v42_v16 = vmul.f32 0.015625, %v41_v15 }
 0x19f   :  { %v43_v17 = vadd.f32 1e-05, %v42_v16 }
 0x1a1   :  { %191 = vrsqrt.f32 %v43_v17 }
 0x1ab   :  { %v192_v18 = vpop.eup %191 }
 0x1ac   :  { %v45_v20 = vmul.f32 %v192_v18, %v37_v7 }
 0x1ae   :  { %v52_v22 = vmul.f32 %v158_v19, %v45_v20 }
 0x1b0   :  { %v59_v23 = vadd.f32 %v159_v21, %v52_v22 }
 0x1b2   :  { %v60_v24 = vpack.c.bf16 %v59_v23, %v59_v23 }
 0x1b4   :  { %180 = vmatmul.mubr.msk.bf16.vlgmr.msra.gmra.mrb[0].mxu0 %vm31_vm0, %v60_v24 }
 0x287   :  { %v137_v26 = vpop.f32.mrb[0].mxu0 }
 0x288   :  { %v138_v27 = vadd.f32 %v160_v25, %v137_v26  ;;  %v181_v28 = vpop.f32.mrb[1].mxu0 }
 0x289   :  { %v140_v29 = vpop.f32.mrb[2].mxu0 }
 0x28a   :  { %143 = vst.msk [vmem:[#allocation2] sm:$0xff] %vm31_vm0, %v138_v27  ;;  %v182_v30 = vpop.f32.mrb[3].mxu0 }
 0x28b   :  { %204 = shalt.err (!%p201_p4)
}
 0x28c   :  { %s205_s4 = scalar_lea.hbm %s296_s5, 128 }
 0x28d   :  { %p206_p5 = scmp.ne.s32.totalorder %s296_s5, %s205_s4  ;;  %p209_p6 = scmp.lt.u32.totalorder %s205_s4, %s296_s5 }
 0x28f   :  { %p211_p7 = pnand %p209_p6, %p206_p5 }
 0x291   :  { %214 = shalt.err (!%p211_p7)
}
 0x292   :  { %153 = dma.vmem_to_hbm [thread:$0]  %s151_s9, 128, %s296_s5, [#allocation3]  }
 0x293   :  { %215 = dma.done.wait [#allocation3], 128  }
 0x294   :  { %216 = vsyncadd [#allocation3], 4294967168 }
 0x295   :  { %157 = vsyncpa [#allocation3], 1 }

// kernel: qwen2_audio_forward.6
= control target key start
LH: loop header
LB: loop body
LE: loop exit
PB: predicated region body
PF: predicated region fallthrough
CT: control target
= control target key end

     0   :  { %s650_s15 = smov 0   ;;  %s720_s0 = inlined_call_operand.vmem [shape: f32[2,9,128], index: 0, kind: input, shape index: {}]   ;;  %s721_s1 = inlined_call_operand.vmem [shape: bf16[192,64], index: 1, kind: input, shape index: {}]   ;;  %s722_s2 = inlined_call_operand.vmem [shape: f32[1,64], index: 2, kind: input, shape index: {}]   ;;  %s723_s3 = inlined_call_operand.vmem [shape: f32[8,64], index: 3, kind: input, shape index: {}]   ;;  %s724_s4 = inlined_call_operand.vmem [shape: f32[2,8,64], index: 4, kind: output, shape index: {}]  }
   0x1 LB: > { %s511_s16 = sadd.s32 4294967295, %s620_s15   ;;  %p515_p0 = scmp.ge.s32.totalorder %s620_s15, 1  ;;  %s620_s15 = sphi %s650_s15, %s14_s15  }
   0x2   : > { %p162_p1 = scmp.lt.s32.totalorder %s620_s15, 3 }
   0x4   : > { %p163_p2 = pnand %p515_p0, %p162_p1 }
   0x5   : > { %p187_p3 = scmp.lt.s32.totalorder (!%p163_p2), %s511_s16, 1  ;;  %v600_v0 = vld [vmem:[%s721_s1 + $0x20] sm:$0xff] (!%p163_p2)   ;;  %v622_v1 = vmov (!%p163_p2), 0.0   ;;  %v602_v3 = vld [vmem:[%s721_s1 + $0x28] sm:$0xff] (!%p163_p2)   ;;  %vm623_vm0 = vmmov (!%p163_p2), 0   ;;  %v604_v7 = vld [vmem:[%s721_s1 + $0x30] sm:$0xff] (!%p163_p2)  }
   0x6   : > { %166 = sbr.rel (%p163_p2) target bundleno = 396 (0x18c), region = 36  ;;  %553 = vmatprep.subr.bf16.mxu0 (!%p163_p2), %v622_v1  ;;  %565 = vmatprep.subr.bf16.mxu1 (!%p163_p2), %v622_v1  ;;  %v601_v2 = vld [vmem:[%s721_s1] sm:$0xff] (!%p163_p2)   ;;  %v603_v4 = vld [vmem:[%s721_s1 + $0x8] sm:$0xff] (!%p163_p2)   ;;  %v605_v10 = vld [vmem:[%s721_s1 + $0x10] sm:$0xff] (!%p163_p2)   ;;  %s624_s7 = smov (!%p163_p2), 64   ;;  %vm244_vm1 = vcmask (!%p163_p2), 523264  }
   0x7   : > { %554 = vmatpush3.bf16.msra.mxu0 (!%p163_p2), %v600_v0  ;;  %566 = vmatpush3.bf16.msra.mxu1 (!%p163_p2), %v601_v2  ;;  %v606_v11 = vld [vmem:[%s721_s1 + $0x38] sm:$0xff] (!%p163_p2)   ;;  %v608_v13 = vld [vmem:[%s721_s1 + $0x40] sm:$0xff] (!%p163_p2)   ;;  %v609_v15 = vld [vmem:[%s721_s1 + $0x48] sm:$0xff] (!%p163_p2)  }
   0x8   : > { %555 = vmatprep.subr.bf16.mxu0 (!%p163_p2), %v622_v1  ;;  %561 = vmatprep.mubr.msk.bf16.mxu0 (!%p163_p2), %vm623_vm0, %v622_v1  ;;  %v607_v12 = vld [vmem:[%s721_s1 + $0x18] sm:$0xff] (!%p163_p2)   ;;  %v610_v17 = vld [vmem:[%s721_s1 + $0x50] sm:$0xff] (!%p163_p2)   ;;  %v534_v32 = vld [vmem:[%s722_s2] ss:$0 sm:$0xff] (!%p163_p2) }
   0x9   : > { %567 = vmatprep.subr.bf16.mxu1 (!%p163_p2), %v622_v1  ;;  %573 = vmatprep.mubr.msk.bf16.mxu1 (!%p163_p2), %vm623_vm0, %v622_v1  ;;  %v611_v20 = vld [vmem:[%s721_s1 + $0x58] sm:$0xff] (!%p163_p2)   ;;  %v455_v46 = vld [vmem:[%s723_s3] sm:$0xff] (!%p163_p2) }
   0xb   : > { %556 = vmatpush3.bf16.msra.mxu0 (!%p163_p2), %v602_v3  ;;  %568 = vmatpush3.bf16.msra.mxu1 (!%p163_p2), %v603_v4 }
   0xc   : > { %557 = vmatprep.subr.bf16.mxu0 (!%p163_p2), %v622_v1  ;;  %569 = vmatprep.subr.bf16.mxu1 (!%p163_p2), %v622_v1 }
   0xd   : > { %s726_s16 = smov (!%p187_p3, %s511_s16), 1 }
   0xe   : > { %s537_s23 = sshll.u32 %s726_s16, 4  ;;  %s518_s24 = sshll.u32 %s726_s16, 3 }
   0xf   : > { %s191_s28 = scalar_lea.vmem %s720_s0, %s537_s23  ;;  %558 = vmatpush3.bf16.msra.mxu0 %v604_v7  ;;  %570 = vmatpush3.bf16.msra.mxu1 %v605_v10  ;;  %s195_s29 = scalar_lea.vmem %s724_s4, %s518_s24 }
  0x10   : > { %v197_v5 = vld [vmem:[%s191_s28] sm:$0xff]  ;;  %v198_v6 = vld [vmem:[%s191_s28 + $0x8] sm:$0x1]  ;;  %559 = vmatprep.subr.bf16.mxu0 %v622_v1  ;;  %571 = vmatprep.subr.bf16.mxu1 %v622_v1 }
  0x11   : > { %v199_v8 = vpack.c.bf16 %v197_v5, %v197_v5  ;;  %v200_v9 = vpack.c.bf16 %v198_v6, %v197_v5 }
  0x13   : > { %218 = vrot.lane.b32.xlu0 %v199_v8, %s624_s7  ;;  %560 = vmatpush3.bf16.msra.mxu0 %v606_v11  ;;  %v366_v16 = vshll.u32 %v200_v9, 16  ;;  %v364_v18 = vshrl.u32 %v200_v9, 16 }
  0x14   : > { %577 = vmatprep.subr.bf16.mxu0 %v622_v1  ;;  %572 = vmatpush3.bf16.msra.mxu1 %v607_v12 }
  0x15   : > { %v368_v19 = vrot.slane %v366_v16, 1 }
  0x17   : > { %574 = vmatmul.mubr.msk.bf16.vlgmr.msra.gmra.mrb[0].mxu1 %vm244_vm1, %v199_v8  ;;  %v369_v21 = vor.u32 %v368_v19, %v364_v18 }
  0x85   : > { %v219_v14 = vpop.permute.xlu0 %218 }
  0x86   : > { %562 = vmatmul.mubr.msk.bf16.vlgmr.msra.gmra.mrb[0].mxu0 %vm244_vm1, %v219_v14 }
  0x87   : > { %578 = vmatpush3.bf16.msra.mxu0 %v608_v13  ;;  %585 = vmatprep.mubr.msk.bf16.mxu0 %vm623_vm0, %v622_v1 }
  0x88   : > { %579 = vmatprep.subr.bf16.mxu0 %v622_v1 }
  0x8b   : > { %580 = vmatpush3.bf16.msra.mxu0 %v609_v15 }
  0x8c   : > { %581 = vmatprep.subr.bf16.mxu0 %v622_v1 }
  0x8f   : > { %582 = vmatpush3.bf16.msra.mxu0 %v610_v17 }
  0x90   : > { %583 = vmatprep.subr.bf16.mxu0 %v622_v1 }
  0x93   : > { %584 = vmatpush3.bf16.msra.mxu0 %v611_v20 }
  0x96   : > { %586 = vmatmul.mubr.msk.bf16.vlgmr.msra.gmra.mrb[4].mxu0 %vm244_vm1, %v369_v21 }
  0xea   : > { %v349_v22 = vpop.f32.mrb[0].mxu1 }
  0xeb   : > { %v575_v23 = vpop.f32.mrb[1].mxu1 }
  0xec   : > { %v352_v24 = vpop.f32.mrb[2].mxu1 }
  0xed   : > { %v576_v25 = vpop.f32.mrb[3].mxu1 }
 0x159   : > { %v282_v26 = vpop.f32.mrb[0].mxu0 }
 0x15a   : > { %v350_v27 = vadd.f32 %v349_v22, %v282_v26  ;;  %v563_v28 = vpop.f32.mrb[1].mxu0 }
 0x15b   : > { %v285_v29 = vpop.f32.mrb[2].mxu0 }
 0x15c   : > { %v564_v30 = vpop.f32.mrb[3].mxu0 }
 0x169   : > { %v431_v31 = vpop.f32.mrb[4].mxu0 }
 0x16a   : > { %v437_v33 = vadd.f32 %v431_v31, %v350_v27  ;;  %v587_v34 = vpop.f32.mrb[5].mxu0 }
 0x16b   : > { %v434_v35 = vpop.f32.mrb[6].mxu0 }
 0x16c   : > { %v445_v36 = vadd.f32 %v534_v32, %v437_v33  ;;  %v588_v37 = vpop.f32.mrb[7].mxu0 }
 0x16e   : > { %v446_v38 = vmul.f32 %v445_v36, %v445_v36 }
 0x170   : > { %v447_v39 = vmul.f32 %v446_v38, %v445_v36 }
 0x172   : > { %v448_v40 = vmul.f32 0.044715, %v447_v39 }
 0x174   : > { %v449_v41 = vadd.f32 %v448_v40, %v445_v36 }
 0x176   : > { %v450_v42 = vmul.f32 0.7978846, %v449_v41 }
 0x178   : > { %612 = vtanh.f32 %v450_v42 }
 0x182   : > { %v613_v43 = vpop.eup %612 }
 0x183   : > { %v452_v44 = vadd.f32 1.0, %v613_v43 }
 0x185   : > { %v453_v45 = vmul.f32 0.5, %v452_v44 }
 0x187   : > { %v454_v47 = vmul.f32 %v453_v45, %v445_v36 }
 0x189   : > { %v456_v48 = vadd.f32 %v455_v46, %v454_v47 }
 0x18b   : > { %457 = vst.msk [vmem:[%s195_s29] sm:$0xff] %vm244_vm1, %v456_v48 }
 0x18c PF: > { %s14_s15 = sadd.s32 1, %s620_s15  }
 0x18d   : > { %p11_p4 = scmp.ge.s32.totalorder %s14_s15, 4  }
 0x18f   :  { %13 = sbr.rel (!%p11_p4) target bundleno = 1 (0x1), region = 66 }

// kernel: qwen2_audio_forward.7
= control target key start
LH: loop header
LB: loop body
LE: loop exit
PB: predicated region body
PF: predicated region fallthrough
CT: control target
= control target key end

     0   :  { %s1744_s25 = smov 0   ;;  %s1971_s0 = inlined_call_operand.vmem [shape: f32[2,8,64], index: 0, kind: input, shape index: {}]   ;;  %s1972_s1 = inlined_call_operand.vmem [shape: f32[1,64], index: 1, kind: input, shape index: {}]   ;;  %s1973_s2 = inlined_call_operand.vmem [shape: f32[1,64], index: 2, kind: input, shape index: {}]   ;;  %s1974_s3 = inlined_call_operand.vmem [shape: bf16[64,192], index: 3, kind: input, shape index: {}]   ;;  %s1975_s4 = inlined_call_operand.vmem [shape: f32[1,192], index: 4, kind: input, shape index: {}]   ;;  %s1976_s5 = inlined_call_operand.vmem [shape: bf16[64,64], index: 5, kind: input, shape index: {}]   ;;  %s1977_s6 = inlined_call_operand.vmem [shape: f32[1,64], index: 6, kind: input, shape index: {}]   ;;  %s1978_s7 = inlined_call_operand.vmem [shape: f32[1,64], index: 7, kind: input, shape index: {}]   ;;  %s1979_s8 = inlined_call_operand.vmem [shape: f32[1,64], index: 8, kind: input, shape index: {}]   ;;  %s1980_s9 = inlined_call_operand.vmem [shape: bf16[64,128], index: 9, kind: input, shape index: {}]   ;;  %s1981_s10 = inlined_call_operand.vmem [shape: f32[1,128], index: 10, kind: input, shape index: {}]   ;;  %s1982_s11 = inlined_call_operand.vmem [shape: bf16[128,64], index: 11, kind: input, shape index: {}]   ;;  %s1983_s12 = inlined_call_operand.vmem [shape: f32[1,64], index: 12, kind: input, shape index: {}]   ;;  %s1984_s13 = inlined_call_operand.vmem [shape: f32[2,8,64], index: 13, kind: output, shape index: {}]  }
   0x1 LB: > { %s1410_s26 = sadd.s32 4294967295, %s1662_s25   ;;  %p1414_p0 = scmp.ge.s32.totalorder %s1662_s25, 1  ;;  %s1662_s25 = sphi %s1744_s25, %s23_s25  }
   0x2   : > { %p386_p1 = scmp.lt.s32.totalorder %s1662_s25, 3 }
   0x4   : > { %p387_p2 = pnand %p1414_p0, %p386_p1 }
   0x5   : > { %p428_p3 = scmp.lt.s32.totalorder (!%p387_p2), %s1410_s26, 1  ;;  %vm440_vm0 = vcmask (!%p387_p2), 523264   ;;  %v1606_v7 = vld [vmem:[%s1974_s3 + $0x4] ss:$8 sps:$4 sm:$0xff] (!%p387_p2)   ;;  %v1608_v8 = vld [vmem:[%s1974_s3] ss:$8 sps:$4 sm:$0xff] (!%p387_p2)   ;;  %v480_v26 = vlaneseq (!%p387_p2) }
   0x6   : > { %390 = sbr.rel (%p387_p2) target bundleno = 2581 (0xa15), region = 72  ;;  %v1609_v9 = vld [vmem:[%s1974_s3 + $0x14] ss:$8 sps:$4 sm:$0xff] (!%p387_p2)   ;;  %533 = vmatprep.subr.bf16.mxu1 (!%p387_p2), %v1606_v7  ;;  %v1611_v10 = vld [vmem:[%s1974_s3 + $0x10] ss:$8 sps:$4 sm:$0xff] (!%p387_p2)   ;;  %v1664_v11 = vmov (!%p387_p2), 0  }
   0x7   : > { %534 = vmatpush1.bf16.msra.mxu1 (!%p387_p2), %v1608_v8  ;;  %565 = vmatprep.mubr.bf16.mxu1 (!%p387_p2), %v1664_v11  ;;  %v1612_v12 = vld [vmem:[%s1974_s3 + $0x24] ss:$8 sps:$4 sm:$0xff] (!%p387_p2)   ;;  %v1614_v13 = vld [vmem:[%s1974_s3 + $0x20] ss:$8 sps:$4 sm:$0xff] (!%p387_p2)   ;;  %v1615_v14 = vld [vmem:[%s1974_s3 + $0x34] ss:$8 sps:$4 sm:$0xff] (!%p387_p2)  }
   0x8   : > { %535 = vmatprep.subr.bf16.mxu1 (!%p387_p2), %v1609_v9  ;;  %v1617_v15 = vld [vmem:[%s1974_s3 + $0x30] ss:$8 sps:$4 sm:$0xff] (!%p387_p2)   ;;  %v1417_v20 = vld [vmem:[%s1972_s1] ss:$0 sm:$0xff] (!%p387_p2)  ;;  %v481_v27 = vshrl.u32 (!%p387_p2), %v480_v26, 7  ;;  %v1665_v28 = vmov (!%p387_p2), 0.0  }
   0x9   : > { %v1418_v22 = vld [vmem:[%s1973_s2] ss:$0 sm:$0xff] (!%p387_p2)  ;;  %1508 = vmatprep.subr.bf16.mxu0 (!%p387_p2), %v1665_v28  ;;  %vm1666_vm1 = vmmov (!%p387_p2), 0   ;;  %s1667_s22 = smov (!%p387_p2), 64   ;;  %s1668_s23 = smov (!%p387_p2), 112   ;;  %vm581_vm2 = vcmask (!%p387_p2), 130048  }
   0xa   : > { %v482_v29 = vsub.s32 (!%p387_p2), 0, %v481_v27  ;;  %v478_v30 = vld [vmem:[%s1975_s4] sm:$0x3] (!%p387_p2)  ;;  %1510 = vmatprep.mubr.msk.bf16.mxu0 (!%p387_p2), %vm1666_vm1, %v1665_v28  ;;  %s1669_s24 = smov (!%p387_p2), 48   ;;  %s1670_s28 = smov (!%p387_p2), 32   ;;  %v486_v40 = vsub.s32 (!%p387_p2), 1, %v481_v27 }
   0xb   : > { %536 = vmatpush1.bf16.msra.mxu1 (!%p387_p2), %v1611_v10  ;;  %s1671_s29 = smov (!%p387_p2), 96   ;;  %s1673_s14 = smov (!%p387_p2), 80   ;;  %vm644_vm3 = vcmask (!%p387_p2), 1043456   ;;  %vm628_vm4 = vcmask (!%p387_p2), 64512   ;;  %vm1033_vm5 = vcmask (!%p387_p2), 261120   ;;  %vm1035_vm6 = vcmask (!%p387_p2), 392192  }
   0xc   : > { %537 = vmatprep.subr.bf16.mxu1 (!%p387_p2), %v1612_v12  ;;  %v483_v31 = vrot.slane (!%p387_p2), %v478_v30, %v482_v29  ;;  %v487_v41 = vrot.slane (!%p387_p2), %v478_v30, %v486_v40 }
   0xd   : > { %s1986_s26 = smov (!%p428_p3, %s1410_s26), 1 }
   0xe   : > { %s1415_s27 = sshll.u32 %s1986_s26, 3 }
   0xf   : > { %s431_s30 = scalar_lea.vmem %s1971_s0, %s1415_s27  ;;  %538 = vmatpush1.bf16.msra.mxu1 %v1614_v13  ;;  %s435_s17 = scalar_lea.vmem %s1984_s13, %s1415_s27 }
  0x10   : > { %v1760_v0 = vld [vmem:[%s431_s30] sm:$0xff]  ;;  %539 = vmatprep.subr.bf16.mxu1 %v1615_v14  ;;  %s1672_s30 = smov 16  }
  0x11   : > { %v441_v1 = vsel %vm440_vm0, %v1760_v0, 0.0 }
  0x12   : > { %442 = vadd.xlane.f32.xlu0 %v441_v1 }
  0x13   : > { %540 = vmatpush1.bf16.msra.mxu1 %v1617_v15 }
  0x14   : > { %1496 = vmatprep.subr.bf16.mxu1 %v1665_v28 }
  0x9f   : > { %v443_v2 = vpop.xlane.xlu0 %442 }
  0xa0   : > { %v445_v3 = vmul.f32 0.015625, %v443_v2 }
  0xa2   : > { %v446_v4 = vsub.f32 %v1760_v0, %v445_v3 }
  0xa4   : > { %v447_v5 = vmul.f32 %v446_v4, %v446_v4 }
  0xa6   : > { %v448_v6 = vsel %vm440_vm0, %v447_v5, 0.0 }
  0xa7   : > { %449 = vadd.xlane.f32.xlu0 %v448_v6 }
 0x134   : > { %v450_v16 = vpop.xlane.xlu0 %449 }
 0x135   : > { %v451_v17 = vmul.f32 0.015625, %v450_v16 }
 0x137   : > { %v452_v18 = vadd.f32 1e-05, %v451_v17 }
 0x139   : > { %1634 = vrsqrt.f32 %v452_v18 }
 0x143   : > { %v1635_v19 = vpop.eup %1634 }
 0x144   : > { %v454_v21 = vmul.f32 %v1635_v19, %v446_v4 }
 0x146   : > { %v461_v23 = vmul.f32 %v1417_v20, %v454_v21 }
 0x148   : > { %v468_v24 = vadd.f32 %v1418_v22, %v461_v23 }
 0x14a   : > { %v469_v25 = vpack.c.bf16 %v468_v24, %v468_v24 }
 0x14c   : > { %1427 = vmatmul.mubr.msk.bf16.vlgmr.msra.gmra.mrb[0].mxu1 %vm440_vm0, %v469_v25 }
 0x14d   : > { %1498 = vmatprep.mubr.msk.bf16.mxu1 %vm1666_vm1, %v1665_v28 }
 0x21f   : > { %v567_v32 = vpop.f32.mrb[0].mxu1 }
 0x220   : > { %v568_v33 = vadd.f32 %v567_v32, %v483_v31  ;;  %v569_v34 = vpop.f32.mrb[1].mxu1 }
 0x221   : > { %v571_v35 = vpop.f32.mrb[2].mxu1  ;;  %v570_v43 = vadd.f32 %v569_v34, %v487_v41 }
 0x222   : > { %v574_v36 = vmul.f32 0.25, %v568_v33  ;;  %v576_v37 = vpack.c.bf16 %v568_v33, %v568_v33  ;;  %v572_v38 = vpop.f32.mrb[3].mxu1 }
 0x223   : > { %v1814_v46 = vpack.c.bf16 %v570_v43, %v570_v43 }
 0x224   : > { %v575_v39 = vpack.c.bf16 %v574_v36, %v574_v36  ;;  %579 = vrot.lane.b32.xlu1 %v576_v37, %s1667_s22 }
 0x225   : > { %v646_v49 = vsel %vm644_vm3, %v1814_v46, 0 }
 0x226   : > { %689 = vrot.lane.b32.xlu0 %v575_v39, %s1668_s23 }
 0x228   : > { %691 = vrot.lane.b32.xlu1 %v576_v37, %s1669_s24 }
 0x22c   : > { %802 = vrot.lane.b32.xlu1 %v576_v37, %s1670_s28 }
 0x230   : > { %800 = vrot.lane.b32.xlu1 %v575_v39, %s1671_s29 }
 0x234   : > { %912 = vrot.lane.b32.xlu1 %v576_v37, %s1672_s30 }
 0x238   : > { %910 = vrot.lane.b32.xlu1 %v575_v39, %s1673_s14 }
 0x296   : > { %v580_v42 = vpop.permute.xlu1 %579 }
 0x297   : > { %v586_v44 = vsel %vm581_vm2, %v580_v42, 0 }
 0x298   : > { %1497 = vmatpush3.bf16.xpose.msra.mxu1 %v586_v44  ;;  %v690_v50 = vpop.permute.xlu0 %689 }
 0x299   : > { %1502 = vmatprep.subr.bf16.mxu1 %v1665_v28 }
 0x29a   : > { %v692_v45 = vpop.permute.xlu1 %691 }
 0x29b   : > { %v697_v47 = vsel %vm581_vm2, %v692_v45, 0 }
 0x29c   : > { %1509 = vmatpush3.bf16.xpose.msra.mxu0 %v697_v47 }
 0x29d   : > { %1520 = vmatprep.subr.bf16.mxu0 %v1665_v28 }
 0x29e   : > { %v803_v48 = vpop.permute.xlu1 %802 }
 0x29f   : > { %1499 = vmatmul.mubr.msk.bf16.vlgmr.msra.gmra.mrb[4].mxu1 %vm581_vm2, %v575_v39  ;;  %v808_v52 = vsel %vm581_vm2, %v803_v48, 0 }
 0x2a0   : > { %1503 = vmatpush3.bf16.msra.mxu1 %v646_v49  ;;  %1504 = vmatprep.mubr.msk.bf16.mxu1 %vm1666_vm1, %v1665_v28 }
 0x2a1   : > { %1514 = vmatprep.subr.bf16.mxu1 %v1665_v28 }
 0x2a2   : > { %v801_v51 = vpop.permute.xlu1 %800 }
 0x2a3   : > { %1511 = vmatmul.mubr.msk.bf16.vlgmr.msra.gmra.mrb[0].mxu0 %vm581_vm2, %v690_v50 }
 0x2a4   : > { %1521 = vmatpush3.bf16.xpose.msra.mxu0 %v808_v52  ;;  %1522 = vmatprep.mubr.msk.bf16.mxu0 %vm1666_vm1, %v1665_v28 }
 0x2a5   : > { %1532 = vmatprep.subr.bf16.mxu0 %v1665_v28 }
 0x2a6   : > { %v913_v53 = vpop.permute.xlu1 %912 }
 0x2a7   : > { %v918_v54 = vsel %vm581_vm2, %v913_v53, 0 }
 0x2aa   : > { %v911_v55 = vpop.permute.xlu1 %910 }
 0x2ab   : > { %1523 = vmatmul.mubr.msk.bf16.vlgmr.msra.gmra.mrb[4].mxu0 %vm581_vm2, %v801_v51 }
 0x2ac   : > { %1533 = vmatpush3.bf16.xpose.msra.mxu0 %v918_v54  ;;  %1534 = vmatprep.mubr.msk.bf16.mxu0 %vm1666_vm1, %v1665_v28 }
 0x2ad   : > { %1544 = vmatprep.subr.bf16.mxu0 %v1665_v28 }
 0x2b3   : > { %1535 = vmatmul.mubr.msk.bf16.vlgmr.msra.gmra.mrb[8].mxu0 %vm581_vm2, %v911_v55 }
 0x2b4   : > { %1552 = vmatprep.mubr.msk.bf16.mxu0 %vm1666_vm1, %v1665_v28 }
 0x372   : > { %v622_v56 = vpop.f32.mrb[4].mxu1 }
 0x373   : > { %v1500_v57 = vpop.f32.mrb[5].mxu1  ;;  %v629_v58 = vsel %vm628_vm4, %v622_v56, -inf }
 0x374   : > { %630 = vmax.xlane.f32.xlu1 %v629_v58  ;;  %v625_v59 = vpop.f32.mrb[6].mxu1 }
 0x375   : > { %v1501_v60 = vpop.f32.mrb[7].mxu1 }
 0x376   : > { %v733_v61 = vpop.f32.mrb[0].mxu0 }
 0x377   : > { %v1512_v62 = vpop.f32.mrb[1].mxu0  ;;  %v739_v63 = vsel %vm628_vm4, %v733_v61, -inf }
 0x378   : > { %740 = vmax.xlane.f32.xlu0 %v739_v63  ;;  %v736_v1 = vpop.f32.mrb[2].mxu0 }
 0x379   : > { %v1513_v2 = vpop.f32.mrb[3].mxu0 }
 0x37a   : > { %v1619_v2 = vld [vmem:[%s1976_s5 + $0x8] sm:$0xff]  }
 0x37e   : > { %v844_v3 = vpop.f32.mrb[4].mxu0 }
 0x37f   : > { %v1524_v4 = vpop.f32.mrb[5].mxu0  ;;  %v850_v5 = vsel %vm628_vm4, %v844_v3, -inf }
 0x380   : > { %v847_v6 = vpop.f32.mrb[6].mxu0  ;;  %851 = vmax.xlane.f32.xlu1 %v850_v5  ;;  %v1621_v4 = vld [vmem:[%s1976_s5 + $0x18] sm:$0xff]  }
 0x381   : > { %v1525_v7 = vpop.f32.mrb[7].mxu0 }
 0x386   : > { %v954_v8 = vpop.f32.mrb[8].mxu0 }
 0x387   : > { %v1536_v9 = vpop.f32.mrb[9].mxu0  ;;  %v960_v10 = vsel %vm628_vm4, %v954_v8, -inf }
 0x388   : > { %961 = vmax.xlane.f32.xlu0 %v960_v10  ;;  %v957_v11 = vpop.f32.mrb[10].mxu0 }
 0x389   : > { %v1537_v12 = vpop.f32.mrb[11].mxu0 }
 0x401   : > { %v631_v13 = vpop.xlane.xlu1 %630 }
 0x402   : > { %v632_v14 = vsub.f32 %v622_v56, %v631_v13  ;;  %v1618_v56 = vld [vmem:[%s1976_s5] sm:$0xff]  }
 0x403   : > { %1545 = vmatpush3.bf16.msra.mxu0 %v1618_v56 }
 0x404   : > { %v633_v15 = vmul.f32 1.442695, %v632_v14  ;;  %1546 = vmatprep.subr.bf16.mxu0 %v1665_v28 }
 0x405   : > { %v741_v16 = vpop.xlane.xlu0 %740 }
 0x406   : > { %1636 = vpow2.f32 %v633_v15  ;;  %v742_v17 = vsub.f32 %v733_v61, %v741_v16 }
 0x407   : > { %1547 = vmatpush3.bf16.msra.mxu0 %v1619_v2 }
 0x408   : > { %v743_v18 = vmul.f32 1.442695, %v742_v17  ;;  %1548 = vmatprep.subr.bf16.mxu0 %v1665_v28 }
 0x40a   : > { %1638 = vpow2.f32 %v743_v18 }
 0x40d   : > { %v852_v29 = vpop.xlane.xlu1 %851 }
 0x40e   : > { %v853_v30 = vsub.f32 %v844_v3, %v852_v29  ;;  %v1620_v3 = vld [vmem:[%s1976_s5 + $0x10] sm:$0xff]  }
 0x40f   : > { %1549 = vmatpush3.bf16.msra.mxu0 %v1620_v3 }
 0x410   : > { %v1637_v19 = vpop.eup %1636  ;;  %v854_v31 = vmul.f32 1.442695, %v853_v30  ;;  %1550 = vmatprep.subr.bf16.mxu0 %v1665_v28 }
 0x411   : > { %v635_v20 = vsel %vm628_vm4, %v1637_v19, 0.0 }
 0x412   : > { %636 = vadd.xlane.f32.xlu1 %v635_v20 }
 0x413   : > { %1551 = vmatpush3.bf16.msra.mxu0 %v1621_v4 }
 0x414   : > { %v1639_v21 = vpop.eup %1638  ;;  %1568 = vmatprep.subr.bf16.mxu0 %v1665_v28 }
 0x415   : > { %v962_v22 = vpop.xlane.xlu0 %961  ;;  %v745_v23 = vsel %vm628_vm4, %v1639_v21, 0.0 }
 0x416   : > { %v963_v24 = vsub.f32 %v954_v8, %v962_v22  ;;  %746 = vadd.xlane.f32.xlu0 %v745_v23 }
 0x418   : > { %v964_v25 = vmul.f32 1.442695, %v963_v24 }
 0x41a   : > { %1640 = vpow2.f32 %v964_v25 }
 0x41b   : > { %1642 = vpow2.f32 %v854_v31 }
 0x423   : > { %752 = vrot.lane.b32.xlu1 %v1814_v46, %s1668_s23 }
 0x424   : > { %v1641_v26 = vpop.eup %1640 }
 0x425   : > { %v966_v27 = vsel %vm628_vm4, %v1641_v26, 0.0  ;;  %v1643_v32 = vpop.eup %1642 }
 0x426   : > { %967 = vadd.xlane.f32.xlu0 %v966_v27  ;;  %v856_v33 = vsel %vm628_vm4, %v1643_v32, 0.0 }
 0x43c   : > { %862 = vrot.lane.b32.xlu0 %v1814_v46, %s1671_s29 }
 0x447   : > { %857 = vadd.xlane.f32.xlu1 %v856_v33 }
 0x458   : > { %972 = vrot.lane.b32.xlu1 %v1814_v46, %s1673_s14 }
 0x49f   : > { %v637_v34 = vpop.xlane.xlu1 %636 }
 0x4a0   : > { %1644 = vrcp.f32 %v637_v34  ;;  %v1623_v34 = vld [vmem:[%s1980_s9 + $0x8] sm:$0xff]  }
 0x4a3   : > { %v747_v35 = vpop.xlane.xlu0 %746  ;;  %v753_v38 = vpop.permute.xlu1 %752 }
 0x4a4   : > { %1646 = vrcp.f32 %v747_v35  ;;  %v758_v41 = vsel %vm644_vm3, %v753_v38, 0  ;;  %v1624_v35 = vld [vmem:[%s1980_s9 + $0x10] sm:$0xff]  }
 0x4aa   : > { %v1645_v36 = vpop.eup %1644 }
 0x4ab   : > { %v639_v37 = vmul.f32 %v1645_v36, %v1637_v19  ;;  %v1625_v36 = vld [vmem:[%s1980_s9 + $0x18] sm:$0xff]  }
 0x4ad   : > { %v640_v39 = vpack.c.bf16 %v639_v37, %v639_v37 }
 0x4ae   : > { %v1647_v40 = vpop.eup %1646 }
 0x4af   : > { %1505 = vmatmul.mubr.msk.bf16.vlgmr.msra.gmra.mrb[8].mxu1 %vm628_vm4, %v640_v39  ;;  %v749_v42 = vmul.f32 %v1647_v40, %v1639_v21  ;;  %v1441_v21 = vld [vmem:[%s1977_s6] ss:$0 sm:$0xff] }
 0x4b0   : > { %1515 = vmatpush3.bf16.msra.mxu1 %v758_v41  ;;  %1516 = vmatprep.mubr.msk.bf16.mxu1 %vm1666_vm1, %v1665_v28  ;;  %v1442_v41 = vld [vmem:[%s1978_s7] ss:$0 sm:$0xff] }
 0x4b1   : > { %1526 = vmatprep.subr.bf16.mxu1 %v1665_v28  ;;  %v750_v44 = vpack.c.bf16 %v749_v42, %v749_v42 }
 0x4b3   : > { %v968_v43 = vpop.xlane.xlu0 %967 }
 0x4b7   : > { %v863_v45 = vpop.permute.xlu0 %862  ;;  %1517 = vmatmul.mubr.msk.bf16.vlgmr.msra.gmra.mrb[12].mxu1 %vm628_vm4, %v750_v44 }
 0x4b8   : > { %v868_v46 = vsel %vm644_vm3, %v863_v45, 0  ;;  %1528 = vmatprep.mubr.msk.bf16.mxu1 %vm1666_vm1, %v1665_v28 }
 0x4b9   : > { %1527 = vmatpush3.bf16.msra.mxu1 %v868_v46 }
 0x4ba   : > { %1538 = vmatprep.subr.bf16.mxu1 %v1665_v28 }
 0x4d4   : > { %v858_v47 = vpop.xlane.xlu1 %857 }
 0x4d5   : > { %1648 = vrcp.f32 %v858_v47  ;;  %v1626_v47 = vld [vmem:[%s1982_s11] sm:$0xff]  }
 0x4d6   : > { %1650 = vrcp.f32 %v968_v43  ;;  %v1443_v43 = vld [vmem:[%s1979_s8] ss:$0 sm:$0xff] }
 0x4d8   : > { %v973_v50 = vpop.permute.xlu1 %972 }
 0x4d9   : > { %v978_v53 = vsel %vm644_vm3, %v973_v50, 0  ;;  %v1629_v50 = vld [vmem:[%s1982_s11 + $0x18] sm:$0xff]  }
 0x4df   : > { %v1649_v48 = vpop.eup %1648 }
 0x4e0   : > { %v860_v49 = vmul.f32 %v1649_v48, %v1643_v32  ;;  %v1651_v52 = vpop.eup %1650  ;;  %v1627_v48 = vld [vmem:[%s1982_s11 + $0x8] sm:$0xff]  }
 0x4e1   : > { %v970_v54 = vmul.f32 %v1651_v52, %v1641_v26  ;;  %v1631_v52 = vld [vmem:[%s1982_s11 + $0x28] sm:$0xff]  }
 0x4e2   : > { %v861_v51 = vpack.c.bf16 %v860_v49, %v860_v49  ;;  %v1628_v49 = vld [vmem:[%s1982_s11 + $0x10] sm:$0xff]  }
 0x4e3   : > { %v971_v55 = vpack.c.bf16 %v970_v54, %v970_v54  ;;  %v1633_v54 = vld [vmem:[%s1982_s11 + $0x38] sm:$0xff]  }
 0x4e4   : > { %1529 = vmatmul.mubr.msk.bf16.vlgmr.msra.gmra.mrb[16].mxu1 %vm628_vm4, %v861_v51  ;;  %v1630_v51 = vld [vmem:[%s1982_s11 + $0x20] sm:$0xff]  }
 0x4e5   : > { %1539 = vmatpush3.bf16.msra.mxu1 %v978_v53  ;;  %1540 = vmatprep.mubr.msk.bf16.mxu1 %vm1666_vm1, %v1665_v28  ;;  %v1632_v53 = vld [vmem:[%s1982_s11 + $0x30] sm:$0xff]  }
 0x4e6   : > { %1556 = vmatprep.subr.bf16.mxu1 %v1665_v28 }
 0x4ec   : > { %1541 = vmatmul.mubr.msk.bf16.vlgmr.msra.gmra.mrb[20].mxu1 %vm628_vm4, %v971_v55  ;;  %v1444_v55 = vld [vmem:[%s1981_s10] ss:$0 sm:$0xff] }
 0x4ed   : > { %1564 = vmatprep.mubr.msk.bf16.mxu1 %vm1666_vm1, %v1665_v28 }
 0x582   : > { %v682_v57 = vpop.f32.mrb[8].mxu1 }
 0x583   : > { %v1506_v58 = vpop.f32.mrb[9].mxu1 }
 0x584   : > { %v685_v59 = vpop.f32.mrb[10].mxu1 }
 0x585   : > { %v1507_v60 = vpop.f32.mrb[11].mxu1 }
 0x58a   : > { %v794_v61 = vpop.f32.mrb[12].mxu1 }
 0x58b   : > { %1021 = vrot.lane.b32.xlu1 %v794_v61, %s1672_s30  ;;  %v1518_v62 = vpop.f32.mrb[13].mxu1 }
 0x58c   : > { %v797_v63 = vpop.f32.mrb[14].mxu1 }
 0x58d   : > { %v1519_v1 = vpop.f32.mrb[15].mxu1 }
 0x5b7   : > { %v904_v5 = vpop.f32.mrb[16].mxu1 }
 0x5b8   : > { %1025 = vrot.lane.b32.xlu0 %v904_v5, %s1670_s28  ;;  %v1530_v6 = vpop.f32.mrb[17].mxu1 }
 0x5b9   : > { %v907_v7 = vpop.f32.mrb[18].mxu1 }
 0x5ba   : > { %v1531_v8 = vpop.f32.mrb[19].mxu1  ;;  %v1450_v7 = vld [vmem:[%s1983_s12] ss:$0 sm:$0xff] }
 0x5bf   : > { %v1014_v9 = vpop.f32.mrb[20].mxu1 }
 0x5c0   : > { %1029 = vrot.lane.b32.xlu1 %v1014_v9, %s1669_s24  ;;  %v1542_v10 = vpop.f32.mrb[21].mxu1 }
 0x5c1   : > { %v1017_v11 = vpop.f32.mrb[22].mxu1 }
 0x5c2   : > { %v1543_v12 = vpop.f32.mrb[23].mxu1 }
 0x5fd   : > { %v1022_v13 = vpop.permute.xlu1 %1021 }
 0x5fe   : > { %v1032_v15 = vsel %vm581_vm2, %v682_v57, %v1022_v13 }
 0x62a   : > { %v1026_v14 = vpop.permute.xlu0 %1025 }
 0x62b   : > { %v1034_v16 = vsel %vm1033_vm5, %v1032_v15, %v1026_v14 }
 0x632   : > { %v1030_v17 = vpop.permute.xlu1 %1029 }
 0x633   : > { %v1036_v18 = vsel %vm1035_vm6, %v1034_v16, %v1030_v17 }
 0x634   : > { %v1037_v19 = vpack.c.bf16 %v1036_v18, %v1036_v18 }
 0x636   : > { %1553 = vmatmul.mubr.msk.bf16.vlgmr.msra.gmra.mrb[12].mxu0 %vm440_vm0, %v1037_v19 }
 0x637   : > { %1584 = vmatprep.mubr.msk.bf16.mxu0 %vm1666_vm1, %v1665_v28  ;;  %1569 = vmatpush3.bf16.msra.mxu0 %v1626_v47 }
 0x638   : > { %1570 = vmatprep.subr.bf16.mxu0 %v1665_v28 }
 0x63b   : > { %1571 = vmatpush3.bf16.msra.mxu0 %v1627_v48 }
 0x63c   : > { %1572 = vmatprep.subr.bf16.mxu0 %v1665_v28 }
 0x63f   : > { %1573 = vmatpush3.bf16.msra.mxu0 %v1628_v49 }
 0x640   : > { %1574 = vmatprep.subr.bf16.mxu0 %v1665_v28 }
 0x643   : > { %1575 = vmatpush3.bf16.msra.mxu0 %v1629_v50 }
 0x644   : > { %1576 = vmatprep.subr.bf16.mxu0 %v1665_v28 }
 0x647   : > { %1577 = vmatpush3.bf16.msra.mxu0 %v1630_v51 }
 0x648   : > { %1578 = vmatprep.subr.bf16.mxu0 %v1665_v28 }
 0x64b   : > { %1579 = vmatpush3.bf16.msra.mxu0 %v1631_v52 }
 0x64c   : > { %1580 = vmatprep.subr.bf16.mxu0 %v1665_v28 }
 0x64f   : > { %1581 = vmatpush3.bf16.msra.mxu0 %v1632_v53 }
 0x650   : > { %1582 = vmatprep.subr.bf16.mxu0 %v1665_v28 }
 0x653   : > { %1583 = vmatpush3.bf16.msra.mxu0 %v1633_v54 }
 0x709   : > { %v1107_v20 = vpop.f32.mrb[12].mxu0 }
 0x70a   : > { %v1113_v22 = vadd.f32 %v1107_v20, %v1760_v0  ;;  %v1554_v23 = vpop.f32.mrb[13].mxu0  ;;  %v1622_v0 = vld [vmem:[%s1980_s9] sm:$0xff]  }
 0x70b   : > { %v1110_v24 = vpop.f32.mrb[14].mxu0  ;;  %1557 = vmatpush3.bf16.msra.mxu1 %v1622_v0 }
 0x70c   : > { %v1896_v25 = vadd.f32 %v1441_v21, %v1113_v22  ;;  %v1555_v26 = vpop.f32.mrb[15].mxu0  ;;  %1558 = vmatprep.subr.bf16.mxu1 %v1665_v28 }
 0x70e   : > { %v1124_v27 = vsel %vm440_vm0, %v1896_v25, 0.0 }
 0x70f   : > { %1125 = vadd.xlane.f32.xlu0 %v1124_v27  ;;  %1559 = vmatpush3.bf16.msra.mxu1 %v1623_v34 }
 0x710   : > { %1560 = vmatprep.subr.bf16.mxu1 %v1665_v28 }
 0x713   : > { %1561 = vmatpush3.bf16.msra.mxu1 %v1624_v35 }
 0x714   : > { %1562 = vmatprep.subr.bf16.mxu1 %v1665_v28 }
 0x717   : > { %1563 = vmatpush3.bf16.msra.mxu1 %v1625_v36 }
 0x79c   : > { %v1126_v29 = vpop.xlane.xlu0 %1125 }
 0x79d   : > { %v1127_v30 = vmul.f32 0.015625, %v1126_v29 }
 0x79f   : > { %v1128_v31 = vsub.f32 %v1896_v25, %v1127_v30 }
 0x7a1   : > { %v1129_v32 = vmul.f32 %v1128_v31, %v1128_v31 }
 0x7a3   : > { %v1130_v33 = vsel %vm440_vm0, %v1129_v32, 0.0 }
 0x7a4   : > { %1131 = vadd.xlane.f32.xlu1 %v1130_v33 }
 0x831   : > { %v1132_v37 = vpop.xlane.xlu1 %1131 }
 0x832   : > { %v1133_v38 = vmul.f32 0.015625, %v1132_v37 }
 0x834   : > { %v1134_v39 = vadd.f32 1e-05, %v1133_v38 }
 0x836   : > { %1652 = vrsqrt.f32 %v1134_v39 }
 0x840   : > { %v1653_v40 = vpop.eup %1652 }
 0x841   : > { %v1136_v42 = vmul.f32 %v1653_v40, %v1128_v31 }
 0x843   : > { %v1143_v44 = vmul.f32 %v1442_v41, %v1136_v42 }
 0x845   : > { %v1150_v45 = vadd.f32 %v1443_v43, %v1143_v44 }
 0x847   : > { %v1151_v46 = vpack.c.bf16 %v1150_v45, %v1150_v45 }
 0x849   : > { %1565 = vmatmul.mubr.msk.bf16.vlgmr.msra.gmra.mrb[24].mxu1 %vm440_vm0, %v1151_v46 }
 0x91c   : > { %v1228_v56 = vpop.f32.mrb[24].mxu1 }
 0x91d   : > { %v1229_v57 = vadd.f32 %v1444_v55, %v1228_v56  ;;  %v1566_v58 = vpop.f32.mrb[25].mxu1 }
 0x91e   : > { %v1231_v59 = vpop.f32.mrb[26].mxu1 }
 0x91f   : > { %v1234_v60 = vmul.f32 %v1229_v57, %v1229_v57  ;;  %v1567_v61 = vpop.f32.mrb[27].mxu1 }
 0x921   : > { %v1235_v62 = vmul.f32 %v1234_v60, %v1229_v57 }
 0x923   : > { %v1236_v63 = vmul.f32 0.044715, %v1235_v62 }
 0x925   : > { %v1237_v1 = vadd.f32 %v1236_v63, %v1229_v57 }
 0x927   : > { %v1238_v2 = vmul.f32 0.7978846, %v1237_v1 }
 0x929   : > { %1654 = vtanh.f32 %v1238_v2 }
 0x933   : > { %v1655_v3 = vpop.eup %1654 }
 0x934   : > { %v1240_v4 = vadd.f32 1.0, %v1655_v3 }
 0x936   : > { %v1241_v28 = vmul.f32 0.5, %v1240_v4 }
 0x938   : > { %v1242_v5 = vmul.f32 %v1241_v28, %v1229_v57 }
 0x93a   : > { %v1243_v6 = vpack.c.bf16 %v1242_v5, %v1242_v5 }
 0x93c   : > { %1585 = vmatmul.mubr.bf16.vlgmr.msra.gmra.mrb[16].mxu0 %v1243_v6 }
 0xa0f   : > { %v1349_v8 = vpop.f32.mrb[16].mxu0 }
 0xa10   : > { %v1350_v9 = vadd.f32 %v1450_v7, %v1349_v8  ;;  %v1586_v10 = vpop.f32.mrb[17].mxu0 }
 0xa11   : > { %v1352_v11 = vpop.f32.mrb[18].mxu0 }
 0xa12   : > { %v1355_v12 = vadd.f32 %v1350_v9, %v1896_v25  ;;  %v1587_v13 = vpop.f32.mrb[19].mxu0 }
 0xa14   : > { %1356 = vst.msk [vmem:[%s435_s17] sm:$0xff] %vm440_vm0, %v1355_v12 }
 0xa15 PF: > { %s23_s25 = sadd.s32 1, %s1662_s25  }
 0xa16   : > { %p20_p4 = scmp.ge.s32.totalorder %s23_s25, 4  }
 0xa18   :  { %22 = sbr.rel (!%p20_p4) target bundleno = 1 (0x1), region = 102 }

</bundles_post_ra>
